<compile_context>
chip_gen: v5e
topology: v5e:2x2
jax: 0.10.0
libtpu: 0.0.40
codegen_flags: <defaults>
</compile_context>

<pallas_src>
import functools

import jax
import jax.numpy as jnp
from jax.experimental import pallas as pl
from jax.experimental.pallas import tpu as pltpu


# ----------------------------------------------------------------------------
# Fused kernel: stacked LSTM (gate order [i, f, g, o], matching nn.LSTM) + FC,
# with the per-layer recurrences interleaved as a wavefront over time.
# ----------------------------------------------------------------------------
def _fused_rnn_kernel(*refs, seq, batch, hidden_dim, n_layers):
    H = hidden_dim
    n_in = 3 + 3 * n_layers
    x_ref = refs[0]                               # (seq*batch, emb)  bf16, time-major
    layer_refs = refs[1:1 + 3 * n_layers]         # per layer: w_ih(bf16), w_hh(bf16), b(f32)
    w_fc_ref = refs[1 + 3 * n_layers]             # (H, out_pad) bf16
    b_fc_ref = refs[2 + 3 * n_layers]             # (1, out_pad) f32
    out_ref = refs[n_in]                          # (batch, out_pad) f32
    gx0_ref = refs[n_in + 1]                      # VMEM scratch: (seq*batch, 4H) f32

    w_ih = [layer_refs[3 * l][...] for l in range(n_layers)]
    w_hh = [layer_refs[3 * l + 1][...] for l in range(n_layers)]
    bias = [layer_refs[3 * l + 2][...] for l in range(n_layers)]

    # Hoisted layer-0 input projection for ALL timesteps: one MXU matmul, written to
    # VMEM scratch so it is not a live vreg value spanning the recurrence loop.
    gx0_ref[...] = (jnp.dot(x_ref[...], w_ih[0],
                            preferred_element_type=jnp.float32) + bias[0])

    def lstm_cell(gates, c_prev):
        # One sigmoid + one tanh over the full lane-dense (batch, 4H=128) gates tile.
        sg = jax.nn.sigmoid(gates)
        tg = jnp.tanh(gates)
        i_g = sg[:, 0 * H:1 * H]
        f_g = sg[:, 1 * H:2 * H]
        g_g = tg[:, 2 * H:3 * H]
        o_g = sg[:, 3 * H:4 * H]
        c_new = f_g * c_prev + i_g * g_g
        h_new = o_g * jnp.tanh(c_new)
        return h_new, c_new

    def step(s, carry):
        hs = list(carry[:n_layers])
        cs = list(carry[n_layers:])
        new_hs, new_cs = [], []
        for l in range(n_layers):                 # unrolled at trace time
            t = s - l                             # time index layer l handles this step
            if l == 0:
                t0 = jnp.minimum(t, seq - 1)      # clamp; result masked when t >= seq
                row = pl.multiple_of(t0 * batch, 8)
                gx = gx0_ref[pl.ds(row, batch), :]
                active = t < seq
            else:
                # Per-step input projection from the PREVIOUS layer's carried hidden
                # state (its value for time t = s - l, produced on the previous
                # wavefront step) — an independent MXU push that pipelines with the
                # other layers' recurrences.
                gx = (jnp.dot(hs[l - 1].astype(jnp.bfloat16), w_ih[l],
                              preferred_element_type=jnp.float32) + bias[l])
                active = jnp.logical_and(t >= 0, t < seq)
            gates = gx + jnp.dot(hs[l].astype(jnp.bfloat16), w_hh[l],
                                 preferred_element_type=jnp.float32)
            h_new, c_new = lstm_cell(gates, cs[l])
            new_hs.append(jnp.where(active, h_new, hs[l]))
            new_cs.append(jnp.where(active, c_new, cs[l]))
        return tuple(new_hs) + tuple(new_cs)

    zeros = jnp.zeros((batch, H), jnp.float32)
    init = (zeros,) * (2 * n_layers)
    total_steps = seq + n_layers - 1
    # Bounded partial unroll once the loop is nontrivial; full unroll for short loops.
    unroll = total_steps if total_steps <= 32 else 8
    carry = jax.lax.fori_loop(0, total_steps, step, init, unroll=unroll)
    h_last = carry[n_layers - 1]

    # Final Linear on the last layer's final hidden state (lane-dense padded output).
    out_ref[...] = (jnp.dot(h_last.astype(jnp.bfloat16), w_fc_ref[...],
                            preferred_element_type=jnp.float32) + b_fc_ref[...])


# ----------------------------------------------------------------------------
# Wrapper: embedding gather + layout padding (plain-JAX glue) + fused kernel call.
# ----------------------------------------------------------------------------
def simple_rnn_forward(text, params, hidden_dim, n_layers):
    batch, seq = text.shape
    emb_dim = params["embedding"].shape[1]
    out_dim = params["w_fc"].shape[1]

    # Alignment padding (sliced off at the end): sublane-align batch, lane-dense FC out.
    batch_p = ((batch + 7) // 8) * 8
    out_pad = ((out_dim + 127) // 128) * 128

    text_p = jnp.pad(text, ((0, batch_p - batch), (0, 0))) if batch_p != batch else text

    # Transpose the tiny int32 index tensor (not the gathered f32 tensor) so the
    # gather directly produces the time-major layout the kernel consumes.
    embedded = params["embedding"][text_p.T]                     # (seq, batch_p, emb)
    x_flat = embedded.reshape(seq * batch_p, emb_dim).astype(jnp.bfloat16)

    w_fc_p = (jnp.zeros((hidden_dim, out_pad), jnp.float32)
              .at[:, :out_dim].set(params["w_fc"]).astype(jnp.bfloat16))
    b_fc_p = jnp.zeros((1, out_pad), jnp.float32).at[:, :out_dim].set(params["b_fc"])

    args = [x_flat]
    for layer in range(n_layers):
        args += [params["w_ih"][layer].astype(jnp.bfloat16),
                 params["w_hh"][layer].astype(jnp.bfloat16),
                 params["b"][layer]]
    args += [w_fc_p, b_fc_p]

    kernel = functools.partial(_fused_rnn_kernel, seq=seq, batch=batch_p,
                               hidden_dim=hidden_dim, n_layers=n_layers)

    # TODO(synk): on v7x (2 TCs) with large batch, add a leading "parallel" grid axis
    # over batch tiles; at these sizes the recurrence is serial so one TC suffices.
    # TODO(synk): at large seq, chunk the hoisted layer-0 projection / gx0 scratch over
    # time so it stays within v7x's 64 MiB VMEM.
    logits_p = pl.pallas_call(
        kernel,
        out_shape=jax.ShapeDtypeStruct((batch_p, out_pad), jnp.float32),
        scratch_shapes=[pltpu.VMEM((seq * batch_p, 4 * hidden_dim), jnp.float32)],
        compiler_params=pltpu.CompilerParams(vmem_limit_bytes=32 << 20),
    )(*args)

    return logits_p[:batch, :out_dim]


# ----------------------------------------------------------------------------
# Pure-JAX reference (sanity check only, f32 throughout)
# ----------------------------------------------------------------------------
def reference_forward(text, params, hidden_dim, n_layers):
    embedded = params["embedding"][text]
    x = embedded                                          # (batch, seq, emb)
    batch = x.shape[0]
    h_final = None
    for layer in range(n_layers):
        w_ih, w_hh, b = params["w_ih"][layer], params["w_hh"][layer], params["b"][layer]

        def step(carry, x_t):
            h, c = carry
            gates = x_t @ w_ih + h @ w_hh + b
            H = hidden_dim
            i = jax.nn.sigmoid(gates[:, :H])
            f = jax.nn.sigmoid(gates[:, H:2 * H])
            g = jnp.tanh(gates[:, 2 * H:3 * H])
            o = jax.nn.sigmoid(gates[:, 3 * H:])
            c = f * c + i * g
            h = o * jnp.tanh(c)
            return (h, c), h

        init = (jnp.zeros((batch, hidden_dim), jnp.float32),
                jnp.zeros((batch, hidden_dim), jnp.float32))
        (h_final, _), out_seq = jax.lax.scan(step, init, jnp.transpose(x, (1, 0, 2)))
        x = jnp.transpose(out_seq, (1, 0, 2))
    return h_final @ params["w_fc"] + params["b_fc"]


# ----------------------------------------------------------------------------
# Deterministic parameter init (shapes follow nn.Embedding / nn.LSTM / nn.Linear)
# ----------------------------------------------------------------------------
def init_params(key, vocab_size, embedding_dim, hidden_dim, output_dim, n_layers):
    keys = jax.random.split(key, 3 + 4 * n_layers)
    scale = 1.0 / jnp.sqrt(hidden_dim)

    emb = jax.random.normal(keys[0], (vocab_size, embedding_dim), jnp.float32) * 0.1
    emb = emb.at[0].set(0.0)   # padding_idx=0

    w_ih, w_hh, b = [], [], []
    for layer in range(n_layers):
        in_dim = embedding_dim if layer == 0 else hidden_dim
        k0, k1, k2, k3 = keys[3 + 4 * layer: 7 + 4 * layer]
        # stored pre-transposed: (in_dim, 4H) / (hidden, 4H); gate order [i, f, g, o]
        w_ih.append(jax.random.uniform(k0, (in_dim, 4 * hidden_dim), jnp.float32,
                                       -scale, scale))
        w_hh.append(jax.random.uniform(k1, (hidden_dim, 4 * hidden_dim), jnp.float32,
                                       -scale, scale))
        b_ih = jax.random.uniform(k2, (4 * hidden_dim,), jnp.float32, -scale, scale)
        b_hh = jax.random.uniform(k3, (4 * hidden_dim,), jnp.float32, -scale, scale)
        b.append((b_ih + b_hh).reshape(1, 4 * hidden_dim))

    w_fc = jax.random.uniform(keys[1], (hidden_dim, output_dim), jnp.float32,
                              -scale, scale)
    b_fc = jax.random.uniform(keys[2], (output_dim,), jnp.float32, -scale, scale)
    b_fc = b_fc.reshape(1, output_dim)

    return {"embedding": emb, "w_ih": w_ih, "w_hh": w_hh, "b": b,
            "w_fc": w_fc, "b_fc": b_fc}


if __name__ == "__main__":
    vocab_size, embedding_dim, hidden_dim, output_dim, n_layers = 50, 16, 32, 2, 2
    batch, seq_len = 2, 8

    key = jax.random.PRNGKey(0)
    pkey, tkey = jax.random.split(key)
    params = init_params(pkey, vocab_size, embedding_dim, hidden_dim,
                         output_dim, n_layers)
    text = jax.random.randint(tkey, (batch, seq_len), 0, vocab_size, dtype=jnp.int32)

    logits = simple_rnn_forward(text, params, hidden_dim, n_layers)
    logits = jax.block_until_ready(logits)

    ref = jax.block_until_ready(reference_forward(text, params, hidden_dim, n_layers))
    assert logits.shape == (batch, output_dim)
    # Tolerance accounts for bf16 MXU operands (f32 accumulation, f32 gate math).
    assert jnp.allclose(logits, ref, rtol=2e-2, atol=2e-2), (logits, ref)

    print("KERNEL_OK")
</pallas_src>

<mosaic_0001>
module attributes {stable_mosaic.version = 11 : i64} {
  func.func @_fused_rnn_kernel(%arg0: memref<64x16xbf16, #tpu.memory_space<vmem>>, %arg1: memref<16x128xbf16, #tpu.memory_space<vmem>>, %arg2: memref<32x128xbf16, #tpu.memory_space<vmem>>, %arg3: memref<1x128xf32, #tpu.memory_space<vmem>>, %arg4: memref<32x128xbf16, #tpu.memory_space<vmem>>, %arg5: memref<32x128xbf16, #tpu.memory_space<vmem>>, %arg6: memref<1x128xf32, #tpu.memory_space<vmem>>, %arg7: memref<32x128xbf16, #tpu.memory_space<vmem>>, %arg8: memref<1x128xf32, #tpu.memory_space<vmem>>, %arg9: memref<8x128xf32, #tpu.memory_space<vmem>>, %arg10: memref<64x128xf32, #tpu.memory_space<vmem>>) attributes {dimension_semantics = [], scalar_prefetch = 0 : i64, scratch_operands = 1 : i64, tpu.core_type = #tpu.core_type<tc>} {
    %c0 = arith.constant 0 : index
    %c0_0 = arith.constant 0 : index
    %0 = vector.load %arg1[%c0, %c0_0] : memref<16x128xbf16, #tpu.memory_space<vmem>>, vector<16x128xbf16>
    %c0_1 = arith.constant 0 : index
    %c0_2 = arith.constant 0 : index
    %1 = vector.load %arg4[%c0_1, %c0_2] : memref<32x128xbf16, #tpu.memory_space<vmem>>, vector<32x128xbf16>
    %c0_3 = arith.constant 0 : index
    %c0_4 = arith.constant 0 : index
    %2 = vector.load %arg2[%c0_3, %c0_4] : memref<32x128xbf16, #tpu.memory_space<vmem>>, vector<32x128xbf16>
    %c0_5 = arith.constant 0 : index
    %c0_6 = arith.constant 0 : index
    %3 = vector.load %arg5[%c0_5, %c0_6] : memref<32x128xbf16, #tpu.memory_space<vmem>>, vector<32x128xbf16>
    %c0_7 = arith.constant 0 : index
    %c0_8 = arith.constant 0 : index
    %4 = vector.load %arg3[%c0_7, %c0_8] : memref<1x128xf32, #tpu.memory_space<vmem>>, vector<1x128xf32>
    %c0_9 = arith.constant 0 : index
    %c0_10 = arith.constant 0 : index
    %5 = vector.load %arg6[%c0_9, %c0_10] : memref<1x128xf32, #tpu.memory_space<vmem>>, vector<1x128xf32>
    %c0_11 = arith.constant 0 : index
    %c0_12 = arith.constant 0 : index
    %6 = vector.load %arg0[%c0_11, %c0_12] : memref<64x16xbf16, #tpu.memory_space<vmem>>, vector<64x16xbf16>
    %cst = arith.constant dense<0.000000e+00> : vector<64x128xf32>
    %7 = tpu.matmul %6, %0, %cst {dimension_numbers = #tpu.dot_dimension_numbers<[1], [0], [0], [1], [0, 0, 1, 1], [], []>} : vector<64x16xbf16>, vector<16x128xbf16>, vector<64x128xf32> -> vector<64x128xf32>
    %8 = vector.broadcast %4 : vector<1x128xf32> to vector<64x128xf32>
    %9 = arith.addf %7, %8 : vector<64x128xf32>
    %c0_13 = arith.constant 0 : index
    %c0_14 = arith.constant 0 : index
    %10 = vector.load %arg10[%c0_13, %c0_14] : memref<64x128xf32, #tpu.memory_space<vmem>>, vector<64x128xf32>
    tpu.vector_store %arg10[%c0_13, %c0_14], %9 {strides = array<i32>} : memref<64x128xf32, #tpu.memory_space<vmem>>, vector<64x128xf32>,
    %cst_15 = arith.constant 0.000000e+00 : f32
    %11 = vector.broadcast %cst_15 : f32 to vector<8x32xf32>
    %c0_i32 = arith.constant 0 : i32
    %c0_i32_16 = arith.constant 0 : i32
    %12 = arith.subi %c0_i32, %c0_i32_16 : i32
    %c7_i32 = arith.constant 7 : i32
    %13 = arith.minsi %12, %c7_i32 : i32
    %c8_i32 = arith.constant 8 : i32
    %14 = arith.muli %13, %c8_i32 : i32
    %15 = tpu.assume_multiple %14, 8 : i32
    %16 = arith.index_cast %15 : i32 to index
    %c0_17 = arith.constant 0 : index
    %17 = vector.load %arg10[%16, %c0_17] : memref<64x128xf32, #tpu.memory_space<vmem>>, vector<8x128xf32>
    %c8_i32_18 = arith.constant 8 : i32
    %18 = arith.cmpi slt, %12, %c8_i32_18 : i32
    %19 = arith.truncf %11 : vector<8x32xf32> to vector<8x32xbf16>
    %cst_19 = arith.constant dense<0.000000e+00> : vector<8x128xf32>
    %20 = tpu.matmul %19, %2, %cst_19 {dimension_numbers = #tpu.dot_dimension_numbers<[1], [0], [0], [1], [0, 0, 1, 1], [], []>} : vector<8x32xbf16>, vector<32x128xbf16>, vector<8x128xf32> -> vector<8x128xf32>
    %21 = arith.addf %17, %20 : vector<8x128xf32>
    %22 = arith.negf %21 : vector<8x128xf32>
    %23 = math.exp %22 : vector<8x128xf32>
    %cst_20 = arith.constant 1.000000e+00 : f32
    %24 = vector.broadcast %cst_20 : f32 to vector<8x128xf32>
    %25 = arith.addf %24, %23 : vector<8x128xf32>
    %26 = arith.divf %24, %25 : vector<8x128xf32>
    %27 = math.tanh %21 : vector<8x128xf32>
    %28 = vector.extract_strided_slice %26 {offsets = [0, 0], sizes = [8, 32], strides = [1, 1]} : vector<8x128xf32> to vector<8x32xf32>
    %29 = vector.extract_strided_slice %26 {offsets = [0, 32], sizes = [8, 32], strides = [1, 1]} : vector<8x128xf32> to vector<8x32xf32>
    %30 = vector.extract_strided_slice %27 {offsets = [0, 64], sizes = [8, 32], strides = [1, 1]} : vector<8x128xf32> to vector<8x32xf32>
    %31 = vector.extract_strided_slice %26 {offsets = [0, 96], sizes = [8, 32], strides = [1, 1]} : vector<8x128xf32> to vector<8x32xf32>
    %32 = arith.mulf %29, %11 : vector<8x32xf32>
    %33 = arith.mulf %28, %30 : vector<8x32xf32>
    %34 = arith.addf %32, %33 : vector<8x32xf32>
    %35 = math.tanh %34 : vector<8x32xf32>
    %36 = arith.mulf %31, %35 : vector<8x32xf32>
    %37 = arith.select %18, %36, %11 : vector<8x32xf32>
    %38 = arith.select %18, %34, %11 : vector<8x32xf32>
    %c1_i32 = arith.constant 1 : i32
    %39 = arith.subi %c0_i32, %c1_i32 : i32
    %40 = arith.truncf %11 : vector<8x32xf32> to vector<8x32xbf16>
    %cst_21 = arith.constant dense<0.000000e+00> : vector<8x128xf32>
    %41 = tpu.matmul %40, %1, %cst_21 {dimension_numbers = #tpu.dot_dimension_numbers<[1], [0], [0], [1], [0, 0, 1, 1], [], []>} : vector<8x32xbf16>, vector<32x128xbf16>, vector<8x128xf32> -> vector<8x128xf32>
    %42 = vector.broadcast %5 : vector<1x128xf32> to vector<8x128xf32>
    %43 = arith.addf %41, %42 : vector<8x128xf32>
    %c0_i32_22 = arith.constant 0 : i32
    %44 = arith.cmpi sge, %39, %c0_i32_22 : i32
    %c8_i32_23 = arith.constant 8 : i32
    %45 = arith.cmpi slt, %39, %c8_i32_23 : i32
    %46 = arith.andi %44, %45 : i1
    %47 = arith.truncf %11 : vector<8x32xf32> to vector<8x32xbf16>
    %cst_24 = arith.constant dense<0.000000e+00> : vector<8x128xf32>
    %48 = tpu.matmul %47, %3, %cst_24 {dimension_numbers = #tpu.dot_dimension_numbers<[1], [0], [0], [1], [0, 0, 1, 1], [], []>} : vector<8x32xbf16>, vector<32x128xbf16>, vector<8x128xf32> -> vector<8x128xf32>
    %49 = arith.addf %43, %48 : vector<8x128xf32>
    %50 = arith.negf %49 : vector<8x128xf32>
    %51 = math.exp %50 : vector<8x128xf32>
    %cst_25 = arith.constant 1.000000e+00 : f32
    %52 = vector.broadcast %cst_25 : f32 to vector<8x128xf32>
    %53 = arith.addf %52, %51 : vector<8x128xf32>
    %54 = arith.divf %52, %53 : vector<8x128xf32>
    %55 = math.tanh %49 : vector<8x128xf32>
    %56 = vector.extract_strided_slice %54 {offsets = [0, 0], sizes = [8, 32], strides = [1, 1]} : vector<8x128xf32> to vector<8x32xf32>
    %57 = vector.extract_strided_slice %54 {offsets = [0, 32], sizes = [8, 32], strides = [1, 1]} : vector<8x128xf32> to vector<8x32xf32>
    %58 = vector.extract_strided_slice %55 {offsets = [0, 64], sizes = [8, 32], strides = [1, 1]} : vector<8x128xf32> to vector<8x32xf32>
    %59 = vector.extract_strided_slice %54 {offsets = [0, 96], sizes = [8, 32], strides = [1, 1]} : vector<8x128xf32> to vector<8x32xf32>
    %60 = arith.mulf %57, %11 : vector<8x32xf32>
    %61 = arith.mulf %56, %58 : vector<8x32xf32>
    %62 = arith.addf %60, %61 : vector<8x32xf32>
    %63 = math.tanh %62 : vector<8x32xf32>
    %64 = arith.mulf %59, %63 : vector<8x32xf32>
    %65 = arith.select %46, %64, %11 : vector<8x32xf32>
    %66 = arith.select %46, %62, %11 : vector<8x32xf32>
    %c1_i32_26 = arith.constant 1 : i32
    %c0_i32_27 = arith.constant 0 : i32
    %67 = arith.subi %c1_i32_26, %c0_i32_27 : i32
    %c7_i32_28 = arith.constant 7 : i32
    %68 = arith.minsi %67, %c7_i32_28 : i32
    %c8_i32_29 = arith.constant 8 : i32
    %69 = arith.muli %68, %c8_i32_29 : i32
    %70 = tpu.assume_multiple %69, 8 : i32
    %71 = arith.index_cast %70 : i32 to index
    %c0_30 = arith.constant 0 : index
    %72 = vector.load %arg10[%71, %c0_30] : memref<64x128xf32, #tpu.memory_space<vmem>>, vector<8x128xf32>
    %c8_i32_31 = arith.constant 8 : i32
    %73 = arith.cmpi slt, %67, %c8_i32_31 : i32
    %74 = arith.truncf %37 : vector<8x32xf32> to vector<8x32xbf16>
    %cst_32 = arith.constant dense<0.000000e+00> : vector<8x128xf32>
    %75 = tpu.matmul %74, %2, %cst_32 {dimension_numbers = #tpu.dot_dimension_numbers<[1], [0], [0], [1], [0, 0, 1, 1], [], []>} : vector<8x32xbf16>, vector<32x128xbf16>, vector<8x128xf32> -> vector<8x128xf32>
    %76 = arith.addf %72, %75 : vector<8x128xf32>
    %77 = arith.negf %76 : vector<8x128xf32>
    %78 = math.exp %77 : vector<8x128xf32>
    %cst_33 = arith.constant 1.000000e+00 : f32
    %79 = vector.broadcast %cst_33 : f32 to vector<8x128xf32>
    %80 = arith.addf %79, %78 : vector<8x128xf32>
    %81 = arith.divf %79, %80 : vector<8x128xf32>
    %82 = math.tanh %76 : vector<8x128xf32>
    %83 = vector.extract_strided_slice %81 {offsets = [0, 0], sizes = [8, 32], strides = [1, 1]} : vector<8x128xf32> to vector<8x32xf32>
    %84 = vector.extract_strided_slice %81 {offsets = [0, 32], sizes = [8, 32], strides = [1, 1]} : vector<8x128xf32> to vector<8x32xf32>
    %85 = vector.extract_strided_slice %82 {offsets = [0, 64], sizes = [8, 32], strides = [1, 1]} : vector<8x128xf32> to vector<8x32xf32>
    %86 = vector.extract_strided_slice %81 {offsets = [0, 96], sizes = [8, 32], strides = [1, 1]} : vector<8x128xf32> to vector<8x32xf32>
    %87 = arith.mulf %84, %38 : vector<8x32xf32>
    %88 = arith.mulf %83, %85 : vector<8x32xf32>
    %89 = arith.addf %87, %88 : vector<8x32xf32>
    %90 = math.tanh %89 : vector<8x32xf32>
    %91 = arith.mulf %86, %90 : vector<8x32xf32>
    %92 = arith.select %73, %91, %37 : vector<8x32xf32>
    %93 = arith.select %73, %89, %38 : vector<8x32xf32>
    %c1_i32_34 = arith.constant 1 : i32
    %94 = arith.subi %c1_i32_26, %c1_i32_34 : i32
    %95 = arith.truncf %37 : vector<8x32xf32> to vector<8x32xbf16>
    %cst_35 = arith.constant dense<0.000000e+00> : vector<8x128xf32>
    %96 = tpu.matmul %95, %1, %cst_35 {dimension_numbers = #tpu.dot_dimension_numbers<[1], [0], [0], [1], [0, 0, 1, 1], [], []>} : vector<8x32xbf16>, vector<32x128xbf16>, vector<8x128xf32> -> vector<8x128xf32>
    %97 = vector.broadcast %5 : vector<1x128xf32> to vector<8x128xf32>
    %98 = arith.addf %96, %97 : vector<8x128xf32>
    %c0_i32_36 = arith.constant 0 : i32
    %99 = arith.cmpi sge, %94, %c0_i32_36 : i32
    %c8_i32_37 = arith.constant 8 : i32
    %100 = arith.cmpi slt, %94, %c8_i32_37 : i32
    %101 = arith.andi %99, %100 : i1
    %102 = arith.truncf %65 : vector<8x32xf32> to vector<8x32xbf16>
    %cst_38 = arith.constant dense<0.000000e+00> : vector<8x128xf32>
    %103 = tpu.matmul %102, %3, %cst_38 {dimension_numbers = #tpu.dot_dimension_numbers<[1], [0], [0], [1], [0, 0, 1, 1], [], []>} : vector<8x32xbf16>, vector<32x128xbf16>, vector<8x128xf32> -> vector<8x128xf32>
    %104 = arith.addf %98, %103 : vector<8x128xf32>
    %105 = arith.negf %104 : vector<8x128xf32>
    %106 = math.exp %105 : vector<8x128xf32>
    %cst_39 = arith.constant 1.000000e+00 : f32
    %107 = vector.broadcast %cst_39 : f32 to vector<8x128xf32>
    %108 = arith.addf %107, %106 : vector<8x128xf32>
    %109 = arith.divf %107, %108 : vector<8x128xf32>
    %110 = math.tanh %104 : vector<8x128xf32>
    %111 = vector.extract_strided_slice %109 {offsets = [0, 0], sizes = [8, 32], strides = [1, 1]} : vector<8x128xf32> to vector<8x32xf32>
    %112 = vector.extract_strided_slice %109 {offsets = [0, 32], sizes = [8, 32], strides = [1, 1]} : vector<8x128xf32> to vector<8x32xf32>
    %113 = vector.extract_strided_slice %110 {offsets = [0, 64], sizes = [8, 32], strides = [1, 1]} : vector<8x128xf32> to vector<8x32xf32>
    %114 = vector.extract_strided_slice %109 {offsets = [0, 96], sizes = [8, 32], strides = [1, 1]} : vector<8x128xf32> to vector<8x32xf32>
    %115 = arith.mulf %112, %66 : vector<8x32xf32>
    %116 = arith.mulf %111, %113 : vector<8x32xf32>
    %117 = arith.addf %115, %116 : vector<8x32xf32>
    %118 = math.tanh %117 : vector<8x32xf32>
    %119 = arith.mulf %114, %118 : vector<8x32xf32>
    %120 = arith.select %101, %119, %65 : vector<8x32xf32>
    %121 = arith.select %101, %117, %66 : vector<8x32xf32>
    %c2_i32 = arith.constant 2 : i32
    %c0_i32_40 = arith.constant 0 : i32
    %122 = arith.subi %c2_i32, %c0_i32_40 : i32
    %c7_i32_41 = arith.constant 7 : i32
    %123 = arith.minsi %122, %c7_i32_41 : i32
    %c8_i32_42 = arith.constant 8 : i32
    %124 = arith.muli %123, %c8_i32_42 : i32
    %125 = tpu.assume_multiple %124, 8 : i32
    %126 = arith.index_cast %125 : i32 to index
    %c0_43 = arith.constant 0 : index
    %127 = vector.load %arg10[%126, %c0_43] : memref<64x128xf32, #tpu.memory_space<vmem>>, vector<8x128xf32>
    %c8_i32_44 = arith.constant 8 : i32
    %128 = arith.cmpi slt, %122, %c8_i32_44 : i32
    %129 = arith.truncf %92 : vector<8x32xf32> to vector<8x32xbf16>
    %cst_45 = arith.constant dense<0.000000e+00> : vector<8x128xf32>
    %130 = tpu.matmul %129, %2, %cst_45 {dimension_numbers = #tpu.dot_dimension_numbers<[1], [0], [0], [1], [0, 0, 1, 1], [], []>} : vector<8x32xbf16>, vector<32x128xbf16>, vector<8x128xf32> -> vector<8x128xf32>
    %131 = arith.addf %127, %130 : vector<8x128xf32>
    %132 = arith.negf %131 : vector<8x128xf32>
    %133 = math.exp %132 : vector<8x128xf32>
    %cst_46 = arith.constant 1.000000e+00 : f32
    %134 = vector.broadcast %cst_46 : f32 to vector<8x128xf32>
    %135 = arith.addf %134, %133 : vector<8x128xf32>
    %136 = arith.divf %134, %135 : vector<8x128xf32>
    %137 = math.tanh %131 : vector<8x128xf32>
    %138 = vector.extract_strided_slice %136 {offsets = [0, 0], sizes = [8, 32], strides = [1, 1]} : vector<8x128xf32> to vector<8x32xf32>
    %139 = vector.extract_strided_slice %136 {offsets = [0, 32], sizes = [8, 32], strides = [1, 1]} : vector<8x128xf32> to vector<8x32xf32>
    %140 = vector.extract_strided_slice %137 {offsets = [0, 64], sizes = [8, 32], strides = [1, 1]} : vector<8x128xf32> to vector<8x32xf32>
    %141 = vector.extract_strided_slice %136 {offsets = [0, 96], sizes = [8, 32], strides = [1, 1]} : vector<8x128xf32> to vector<8x32xf32>
    %142 = arith.mulf %139, %93 : vector<8x32xf32>
    %143 = arith.mulf %138, %140 : vector<8x32xf32>
    %144 = arith.addf %142, %143 : vector<8x32xf32>
    %145 = math.tanh %144 : vector<8x32xf32>
    %146 = arith.mulf %141, %145 : vector<8x32xf32>
    %147 = arith.select %128, %146, %92 : vector<8x32xf32>
    %148 = arith.select %128, %144, %93 : vector<8x32xf32>
    %c1_i32_47 = arith.constant 1 : i32
    %149 = arith.subi %c2_i32, %c1_i32_47 : i32
    %150 = arith.truncf %92 : vector<8x32xf32> to vector<8x32xbf16>
    %cst_48 = arith.constant dense<0.000000e+00> : vector<8x128xf32>
    %151 = tpu.matmul %150, %1, %cst_48 {dimension_numbers = #tpu.dot_dimension_numbers<[1], [0], [0], [1], [0, 0, 1, 1], [], []>} : vector<8x32xbf16>, vector<32x128xbf16>, vector<8x128xf32> -> vector<8x128xf32>
    %152 = vector.broadcast %5 : vector<1x128xf32> to vector<8x128xf32>
    %153 = arith.addf %151, %152 : vector<8x128xf32>
    %c0_i32_49 = arith.constant 0 : i32
    %154 = arith.cmpi sge, %149, %c0_i32_49 : i32
    %c8_i32_50 = arith.constant 8 : i32
    %155 = arith.cmpi slt, %149, %c8_i32_50 : i32
    %156 = arith.andi %154, %155 : i1
    %157 = arith.truncf %120 : vector<8x32xf32> to vector<8x32xbf16>
    %cst_51 = arith.constant dense<0.000000e+00> : vector<8x128xf32>
    %158 = tpu.matmul %157, %3, %cst_51 {dimension_numbers = #tpu.dot_dimension_numbers<[1], [0], [0], [1], [0, 0, 1, 1], [], []>} : vector<8x32xbf16>, vector<32x128xbf16>, vector<8x128xf32> -> vector<8x128xf32>
    %159 = arith.addf %153, %158 : vector<8x128xf32>
    %160 = arith.negf %159 : vector<8x128xf32>
    %161 = math.exp %160 : vector<8x128xf32>
    %cst_52 = arith.constant 1.000000e+00 : f32
    %162 = vector.broadcast %cst_52 : f32 to vector<8x128xf32>
    %163 = arith.addf %162, %161 : vector<8x128xf32>
    %164 = arith.divf %162, %163 : vector<8x128xf32>
    %165 = math.tanh %159 : vector<8x128xf32>
    %166 = vector.extract_strided_slice %164 {offsets = [0, 0], sizes = [8, 32], strides = [1, 1]} : vector<8x128xf32> to vector<8x32xf32>
    %167 = vector.extract_strided_slice %164 {offsets = [0, 32], sizes = [8, 32], strides = [1, 1]} : vector<8x128xf32> to vector<8x32xf32>
    %168 = vector.extract_strided_slice %165 {offsets = [0, 64], sizes = [8, 32], strides = [1, 1]} : vector<8x128xf32> to vector<8x32xf32>
    %169 = vector.extract_strided_slice %164 {offsets = [0, 96], sizes = [8, 32], strides = [1, 1]} : vector<8x128xf32> to vector<8x32xf32>
    %170 = arith.mulf %167, %121 : vector<8x32xf32>
    %171 = arith.mulf %166, %168 : vector<8x32xf32>
    %172 = arith.addf %170, %171 : vector<8x32xf32>
    %173 = math.tanh %172 : vector<8x32xf32>
    %174 = arith.mulf %169, %173 : vector<8x32xf32>
    %175 = arith.select %156, %174, %120 : vector<8x32xf32>
    %176 = arith.select %156, %172, %121 : vector<8x32xf32>
    %c3_i32 = arith.constant 3 : i32
    %c0_i32_53 = arith.constant 0 : i32
    %177 = arith.subi %c3_i32, %c0_i32_53 : i32
    %c7_i32_54 = arith.constant 7 : i32
    %178 = arith.minsi %177, %c7_i32_54 : i32
    %c8_i32_55 = arith.constant 8 : i32
    %179 = arith.muli %178, %c8_i32_55 : i32
    %180 = tpu.assume_multiple %179, 8 : i32
    %181 = arith.index_cast %180 : i32 to index
    %c0_56 = arith.constant 0 : index
    %182 = vector.load %arg10[%181, %c0_56] : memref<64x128xf32, #tpu.memory_space<vmem>>, vector<8x128xf32>
    %c8_i32_57 = arith.constant 8 : i32
    %183 = arith.cmpi slt, %177, %c8_i32_57 : i32
    %184 = arith.truncf %147 : vector<8x32xf32> to vector<8x32xbf16>
    %cst_58 = arith.constant dense<0.000000e+00> : vector<8x128xf32>
    %185 = tpu.matmul %184, %2, %cst_58 {dimension_numbers = #tpu.dot_dimension_numbers<[1], [0], [0], [1], [0, 0, 1, 1], [], []>} : vector<8x32xbf16>, vector<32x128xbf16>, vector<8x128xf32> -> vector<8x128xf32>
    %186 = arith.addf %182, %185 : vector<8x128xf32>
    %187 = arith.negf %186 : vector<8x128xf32>
    %188 = math.exp %187 : vector<8x128xf32>
    %cst_59 = arith.constant 1.000000e+00 : f32
    %189 = vector.broadcast %cst_59 : f32 to vector<8x128xf32>
    %190 = arith.addf %189, %188 : vector<8x128xf32>
    %191 = arith.divf %189, %190 : vector<8x128xf32>
    %192 = math.tanh %186 : vector<8x128xf32>
    %193 = vector.extract_strided_slice %191 {offsets = [0, 0], sizes = [8, 32], strides = [1, 1]} : vector<8x128xf32> to vector<8x32xf32>
    %194 = vector.extract_strided_slice %191 {offsets = [0, 32], sizes = [8, 32], strides = [1, 1]} : vector<8x128xf32> to vector<8x32xf32>
    %195 = vector.extract_strided_slice %192 {offsets = [0, 64], sizes = [8, 32], strides = [1, 1]} : vector<8x128xf32> to vector<8x32xf32>
    %196 = vector.extract_strided_slice %191 {offsets = [0, 96], sizes = [8, 32], strides = [1, 1]} : vector<8x128xf32> to vector<8x32xf32>
    %197 = arith.mulf %194, %148 : vector<8x32xf32>
    %198 = arith.mulf %193, %195 : vector<8x32xf32>
    %199 = arith.addf %197, %198 : vector<8x32xf32>
    %200 = math.tanh %199 : vector<8x32xf32>
    %201 = arith.mulf %196, %200 : vector<8x32xf32>
    %202 = arith.select %183, %201, %147 : vector<8x32xf32>
    %203 = arith.select %183, %199, %148 : vector<8x32xf32>
    %c1_i32_60 = arith.constant 1 : i32
    %204 = arith.subi %c3_i32, %c1_i32_60 : i32
    %205 = arith.truncf %147 : vector<8x32xf32> to vector<8x32xbf16>
    %cst_61 = arith.constant dense<0.000000e+00> : vector<8x128xf32>
    %206 = tpu.matmul %205, %1, %cst_61 {dimension_numbers = #tpu.dot_dimension_numbers<[1], [0], [0], [1], [0, 0, 1, 1], [], []>} : vector<8x32xbf16>, vector<32x128xbf16>, vector<8x128xf32> -> vector<8x128xf32>
    %207 = vector.broadcast %5 : vector<1x128xf32> to vector<8x128xf32>
    %208 = arith.addf %206, %207 : vector<8x128xf32>
    %c0_i32_62 = arith.constant 0 : i32
    %209 = arith.cmpi sge, %204, %c0_i32_62 : i32
    %c8_i32_63 = arith.constant 8 : i32
    %210 = arith.cmpi slt, %204, %c8_i32_63 : i32
    %211 = arith.andi %209, %210 : i1
    %212 = arith.truncf %175 : vector<8x32xf32> to vector<8x32xbf16>
    %cst_64 = arith.constant dense<0.000000e+00> : vector<8x128xf32>
    %213 = tpu.matmul %212, %3, %cst_64 {dimension_numbers = #tpu.dot_dimension_numbers<[1], [0], [0], [1], [0, 0, 1, 1], [], []>} : vector<8x32xbf16>, vector<32x128xbf16>, vector<8x128xf32> -> vector<8x128xf32>
    %214 = arith.addf %208, %213 : vector<8x128xf32>
    %215 = arith.negf %214 : vector<8x128xf32>
    %216 = math.exp %215 : vector<8x128xf32>
    %cst_65 = arith.constant 1.000000e+00 : f32
    %217 = vector.broadcast %cst_65 : f32 to vector<8x128xf32>
    %218 = arith.addf %217, %216 : vector<8x128xf32>
    %219 = arith.divf %217, %218 : vector<8x128xf32>
    %220 = math.tanh %214 : vector<8x128xf32>
    %221 = vector.extract_strided_slice %219 {offsets = [0, 0], sizes = [8, 32], strides = [1, 1]} : vector<8x128xf32> to vector<8x32xf32>
    %222 = vector.extract_strided_slice %219 {offsets = [0, 32], sizes = [8, 32], strides = [1, 1]} : vector<8x128xf32> to vector<8x32xf32>
    %223 = vector.extract_strided_slice %220 {offsets = [0, 64], sizes = [8, 32], strides = [1, 1]} : vector<8x128xf32> to vector<8x32xf32>
    %224 = vector.extract_strided_slice %219 {offsets = [0, 96], sizes = [8, 32], strides = [1, 1]} : vector<8x128xf32> to vector<8x32xf32>
    %225 = arith.mulf %222, %176 : vector<8x32xf32>
    %226 = arith.mulf %221, %223 : vector<8x32xf32>
    %227 = arith.addf %225, %226 : vector<8x32xf32>
    %228 = math.tanh %227 : vector<8x32xf32>
    %229 = arith.mulf %224, %228 : vector<8x32xf32>
    %230 = arith.select %211, %229, %175 : vector<8x32xf32>
    %231 = arith.select %211, %227, %176 : vector<8x32xf32>
    %c4_i32 = arith.constant 4 : i32
    %c0_i32_66 = arith.constant 0 : i32
    %232 = arith.subi %c4_i32, %c0_i32_66 : i32
    %c7_i32_67 = arith.constant 7 : i32
    %233 = arith.minsi %232, %c7_i32_67 : i32
    %c8_i32_68 = arith.constant 8 : i32
    %234 = arith.muli %233, %c8_i32_68 : i32
    %235 = tpu.assume_multiple %234, 8 : i32
    %236 = arith.index_cast %235 : i32 to index
    %c0_69 = arith.constant 0 : index
    %237 = vector.load %arg10[%236, %c0_69] : memref<64x128xf32, #tpu.memory_space<vmem>>, vector<8x128xf32>
    %c8_i32_70 = arith.constant 8 : i32
    %238 = arith.cmpi slt, %232, %c8_i32_70 : i32
    %239 = arith.truncf %202 : vector<8x32xf32> to vector<8x32xbf16>
    %cst_71 = arith.constant dense<0.000000e+00> : vector<8x128xf32>
    %240 = tpu.matmul %239, %2, %cst_71 {dimension_numbers = #tpu.dot_dimension_numbers<[1], [0], [0], [1], [0, 0, 1, 1], [], []>} : vector<8x32xbf16>, vector<32x128xbf16>, vector<8x128xf32> -> vector<8x128xf32>
    %241 = arith.addf %237, %240 : vector<8x128xf32>
    %242 = arith.negf %241 : vector<8x128xf32>
    %243 = math.exp %242 : vector<8x128xf32>
    %cst_72 = arith.constant 1.000000e+00 : f32
    %244 = vector.broadcast %cst_72 : f32 to vector<8x128xf32>
    %245 = arith.addf %244, %243 : vector<8x128xf32>
    %246 = arith.divf %244, %245 : vector<8x128xf32>
    %247 = math.tanh %241 : vector<8x128xf32>
    %248 = vector.extract_strided_slice %246 {offsets = [0, 0], sizes = [8, 32], strides = [1, 1]} : vector<8x128xf32> to vector<8x32xf32>
    %249 = vector.extract_strided_slice %246 {offsets = [0, 32], sizes = [8, 32], strides = [1, 1]} : vector<8x128xf32> to vector<8x32xf32>
    %250 = vector.extract_strided_slice %247 {offsets = [0, 64], sizes = [8, 32], strides = [1, 1]} : vector<8x128xf32> to vector<8x32xf32>
    %251 = vector.extract_strided_slice %246 {offsets = [0, 96], sizes = [8, 32], strides = [1, 1]} : vector<8x128xf32> to vector<8x32xf32>
    %252 = arith.mulf %249, %203 : vector<8x32xf32>
    %253 = arith.mulf %248, %250 : vector<8x32xf32>
    %254 = arith.addf %252, %253 : vector<8x32xf32>
    %255 = math.tanh %254 : vector<8x32xf32>
    %256 = arith.mulf %251, %255 : vector<8x32xf32>
    %257 = arith.select %238, %256, %202 : vector<8x32xf32>
    %258 = arith.select %238, %254, %203 : vector<8x32xf32>
    %c1_i32_73 = arith.constant 1 : i32
    %259 = arith.subi %c4_i32, %c1_i32_73 : i32
    %260 = arith.truncf %202 : vector<8x32xf32> to vector<8x32xbf16>
    %cst_74 = arith.constant dense<0.000000e+00> : vector<8x128xf32>
    %261 = tpu.matmul %260, %1, %cst_74 {dimension_numbers = #tpu.dot_dimension_numbers<[1], [0], [0], [1], [0, 0, 1, 1], [], []>} : vector<8x32xbf16>, vector<32x128xbf16>, vector<8x128xf32> -> vector<8x128xf32>
    %262 = vector.broadcast %5 : vector<1x128xf32> to vector<8x128xf32>
    %263 = arith.addf %261, %262 : vector<8x128xf32>
    %c0_i32_75 = arith.constant 0 : i32
    %264 = arith.cmpi sge, %259, %c0_i32_75 : i32
    %c8_i32_76 = arith.constant 8 : i32
    %265 = arith.cmpi slt, %259, %c8_i32_76 : i32
    %266 = arith.andi %264, %265 : i1
    %267 = arith.truncf %230 : vector<8x32xf32> to vector<8x32xbf16>
    %cst_77 = arith.constant dense<0.000000e+00> : vector<8x128xf32>
    %268 = tpu.matmul %267, %3, %cst_77 {dimension_numbers = #tpu.dot_dimension_numbers<[1], [0], [0], [1], [0, 0, 1, 1], [], []>} : vector<8x32xbf16>, vector<32x128xbf16>, vector<8x128xf32> -> vector<8x128xf32>
    %269 = arith.addf %263, %268 : vector<8x128xf32>
    %270 = arith.negf %269 : vector<8x128xf32>
    %271 = math.exp %270 : vector<8x128xf32>
    %cst_78 = arith.constant 1.000000e+00 : f32
    %272 = vector.broadcast %cst_78 : f32 to vector<8x128xf32>
    %273 = arith.addf %272, %271 : vector<8x128xf32>
    %274 = arith.divf %272, %273 : vector<8x128xf32>
    %275 = math.tanh %269 : vector<8x128xf32>
    %276 = vector.extract_strided_slice %274 {offsets = [0, 0], sizes = [8, 32], strides = [1, 1]} : vector<8x128xf32> to vector<8x32xf32>
    %277 = vector.extract_strided_slice %274 {offsets = [0, 32], sizes = [8, 32], strides = [1, 1]} : vector<8x128xf32> to vector<8x32xf32>
    %278 = vector.extract_strided_slice %275 {offsets = [0, 64], sizes = [8, 32], strides = [1, 1]} : vector<8x128xf32> to vector<8x32xf32>
    %279 = vector.extract_strided_slice %274 {offsets = [0, 96], sizes = [8, 32], strides = [1, 1]} : vector<8x128xf32> to vector<8x32xf32>
    %280 = arith.mulf %277, %231 : vector<8x32xf32>
    %281 = arith.mulf %276, %278 : vector<8x32xf32>
    %282 = arith.addf %280, %281 : vector<8x32xf32>
    %283 = math.tanh %282 : vector<8x32xf32>
    %284 = arith.mulf %279, %283 : vector<8x32xf32>
    %285 = arith.select %266, %284, %230 : vector<8x32xf32>
    %286 = arith.select %266, %282, %231 : vector<8x32xf32>
    %c5_i32 = arith.constant 5 : i32
    %c0_i32_79 = arith.constant 0 : i32
    %287 = arith.subi %c5_i32, %c0_i32_79 : i32
    %c7_i32_80 = arith.constant 7 : i32
    %288 = arith.minsi %287, %c7_i32_80 : i32
    %c8_i32_81 = arith.constant 8 : i32
    %289 = arith.muli %288, %c8_i32_81 : i32
    %290 = tpu.assume_multiple %289, 8 : i32
    %291 = arith.index_cast %290 : i32 to index
    %c0_82 = arith.constant 0 : index
    %292 = vector.load %arg10[%291, %c0_82] : memref<64x128xf32, #tpu.memory_space<vmem>>, vector<8x128xf32>
    %c8_i32_83 = arith.constant 8 : i32
    %293 = arith.cmpi slt, %287, %c8_i32_83 : i32
    %294 = arith.truncf %257 : vector<8x32xf32> to vector<8x32xbf16>
    %cst_84 = arith.constant dense<0.000000e+00> : vector<8x128xf32>
    %295 = tpu.matmul %294, %2, %cst_84 {dimension_numbers = #tpu.dot_dimension_numbers<[1], [0], [0], [1], [0, 0, 1, 1], [], []>} : vector<8x32xbf16>, vector<32x128xbf16>, vector<8x128xf32> -> vector<8x128xf32>
    %296 = arith.addf %292, %295 : vector<8x128xf32>
    %297 = arith.negf %296 : vector<8x128xf32>
    %298 = math.exp %297 : vector<8x128xf32>
    %cst_85 = arith.constant 1.000000e+00 : f32
    %299 = vector.broadcast %cst_85 : f32 to vector<8x128xf32>
    %300 = arith.addf %299, %298 : vector<8x128xf32>
    %301 = arith.divf %299, %300 : vector<8x128xf32>
    %302 = math.tanh %296 : vector<8x128xf32>
    %303 = vector.extract_strided_slice %301 {offsets = [0, 0], sizes = [8, 32], strides = [1, 1]} : vector<8x128xf32> to vector<8x32xf32>
    %304 = vector.extract_strided_slice %301 {offsets = [0, 32], sizes = [8, 32], strides = [1, 1]} : vector<8x128xf32> to vector<8x32xf32>
    %305 = vector.extract_strided_slice %302 {offsets = [0, 64], sizes = [8, 32], strides = [1, 1]} : vector<8x128xf32> to vector<8x32xf32>
    %306 = vector.extract_strided_slice %301 {offsets = [0, 96], sizes = [8, 32], strides = [1, 1]} : vector<8x128xf32> to vector<8x32xf32>
    %307 = arith.mulf %304, %258 : vector<8x32xf32>
    %308 = arith.mulf %303, %305 : vector<8x32xf32>
    %309 = arith.addf %307, %308 : vector<8x32xf32>
    %310 = math.tanh %309 : vector<8x32xf32>
    %311 = arith.mulf %306, %310 : vector<8x32xf32>
    %312 = arith.select %293, %311, %257 : vector<8x32xf32>
    %313 = arith.select %293, %309, %258 : vector<8x32xf32>
    %c1_i32_86 = arith.constant 1 : i32
    %314 = arith.subi %c5_i32, %c1_i32_86 : i32
    %315 = arith.truncf %257 : vector<8x32xf32> to vector<8x32xbf16>
    %cst_87 = arith.constant dense<0.000000e+00> : vector<8x128xf32>
    %316 = tpu.matmul %315, %1, %cst_87 {dimension_numbers = #tpu.dot_dimension_numbers<[1], [0], [0], [1], [0, 0, 1, 1], [], []>} : vector<8x32xbf16>, vector<32x128xbf16>, vector<8x128xf32> -> vector<8x128xf32>
    %317 = vector.broadcast %5 : vector<1x128xf32> to vector<8x128xf32>
    %318 = arith.addf %316, %317 : vector<8x128xf32>
    %c0_i32_88 = arith.constant 0 : i32
    %319 = arith.cmpi sge, %314, %c0_i32_88 : i32
    %c8_i32_89 = arith.constant 8 : i32
    %320 = arith.cmpi slt, %314, %c8_i32_89 : i32
    %321 = arith.andi %319, %320 : i1
    %322 = arith.truncf %285 : vector<8x32xf32> to vector<8x32xbf16>
    %cst_90 = arith.constant dense<0.000000e+00> : vector<8x128xf32>
    %323 = tpu.matmul %322, %3, %cst_90 {dimension_numbers = #tpu.dot_dimension_numbers<[1], [0], [0], [1], [0, 0, 1, 1], [], []>} : vector<8x32xbf16>, vector<32x128xbf16>, vector<8x128xf32> -> vector<8x128xf32>
    %324 = arith.addf %318, %323 : vector<8x128xf32>
    %325 = arith.negf %324 : vector<8x128xf32>
    %326 = math.exp %325 : vector<8x128xf32>
    %cst_91 = arith.constant 1.000000e+00 : f32
    %327 = vector.broadcast %cst_91 : f32 to vector<8x128xf32>
    %328 = arith.addf %327, %326 : vector<8x128xf32>
    %329 = arith.divf %327, %328 : vector<8x128xf32>
    %330 = math.tanh %324 : vector<8x128xf32>
    %331 = vector.extract_strided_slice %329 {offsets = [0, 0], sizes = [8, 32], strides = [1, 1]} : vector<8x128xf32> to vector<8x32xf32>
    %332 = vector.extract_strided_slice %329 {offsets = [0, 32], sizes = [8, 32], strides = [1, 1]} : vector<8x128xf32> to vector<8x32xf32>
    %333 = vector.extract_strided_slice %330 {offsets = [0, 64], sizes = [8, 32], strides = [1, 1]} : vector<8x128xf32> to vector<8x32xf32>
    %334 = vector.extract_strided_slice %329 {offsets = [0, 96], sizes = [8, 32], strides = [1, 1]} : vector<8x128xf32> to vector<8x32xf32>
    %335 = arith.mulf %332, %286 : vector<8x32xf32>
    %336 = arith.mulf %331, %333 : vector<8x32xf32>
    %337 = arith.addf %335, %336 : vector<8x32xf32>
    %338 = math.tanh %337 : vector<8x32xf32>
    %339 = arith.mulf %334, %338 : vector<8x32xf32>
    %340 = arith.select %321, %339, %285 : vector<8x32xf32>
    %341 = arith.select %321, %337, %286 : vector<8x32xf32>
    %c6_i32 = arith.constant 6 : i32
    %c0_i32_92 = arith.constant 0 : i32
    %342 = arith.subi %c6_i32, %c0_i32_92 : i32
    %c7_i32_93 = arith.constant 7 : i32
    %343 = arith.minsi %342, %c7_i32_93 : i32
    %c8_i32_94 = arith.constant 8 : i32
    %344 = arith.muli %343, %c8_i32_94 : i32
    %345 = tpu.assume_multiple %344, 8 : i32
    %346 = arith.index_cast %345 : i32 to index
    %c0_95 = arith.constant 0 : index
    %347 = vector.load %arg10[%346, %c0_95] : memref<64x128xf32, #tpu.memory_space<vmem>>, vector<8x128xf32>
    %c8_i32_96 = arith.constant 8 : i32
    %348 = arith.cmpi slt, %342, %c8_i32_96 : i32
    %349 = arith.truncf %312 : vector<8x32xf32> to vector<8x32xbf16>
    %cst_97 = arith.constant dense<0.000000e+00> : vector<8x128xf32>
    %350 = tpu.matmul %349, %2, %cst_97 {dimension_numbers = #tpu.dot_dimension_numbers<[1], [0], [0], [1], [0, 0, 1, 1], [], []>} : vector<8x32xbf16>, vector<32x128xbf16>, vector<8x128xf32> -> vector<8x128xf32>
    %351 = arith.addf %347, %350 : vector<8x128xf32>
    %352 = arith.negf %351 : vector<8x128xf32>
    %353 = math.exp %352 : vector<8x128xf32>
    %cst_98 = arith.constant 1.000000e+00 : f32
    %354 = vector.broadcast %cst_98 : f32 to vector<8x128xf32>
    %355 = arith.addf %354, %353 : vector<8x128xf32>
    %356 = arith.divf %354, %355 : vector<8x128xf32>
    %357 = math.tanh %351 : vector<8x128xf32>
    %358 = vector.extract_strided_slice %356 {offsets = [0, 0], sizes = [8, 32], strides = [1, 1]} : vector<8x128xf32> to vector<8x32xf32>
    %359 = vector.extract_strided_slice %356 {offsets = [0, 32], sizes = [8, 32], strides = [1, 1]} : vector<8x128xf32> to vector<8x32xf32>
    %360 = vector.extract_strided_slice %357 {offsets = [0, 64], sizes = [8, 32], strides = [1, 1]} : vector<8x128xf32> to vector<8x32xf32>
    %361 = vector.extract_strided_slice %356 {offsets = [0, 96], sizes = [8, 32], strides = [1, 1]} : vector<8x128xf32> to vector<8x32xf32>
    %362 = arith.mulf %359, %313 : vector<8x32xf32>
    %363 = arith.mulf %358, %360 : vector<8x32xf32>
    %364 = arith.addf %362, %363 : vector<8x32xf32>
    %365 = math.tanh %364 : vector<8x32xf32>
    %366 = arith.mulf %361, %365 : vector<8x32xf32>
    %367 = arith.select %348, %366, %312 : vector<8x32xf32>
    %368 = arith.select %348, %364, %313 : vector<8x32xf32>
    %c1_i32_99 = arith.constant 1 : i32
    %369 = arith.subi %c6_i32, %c1_i32_99 : i32
    %370 = arith.truncf %312 : vector<8x32xf32> to vector<8x32xbf16>
    %cst_100 = arith.constant dense<0.000000e+00> : vector<8x128xf32>
    %371 = tpu.matmul %370, %1, %cst_100 {dimension_numbers = #tpu.dot_dimension_numbers<[1], [0], [0], [1], [0, 0, 1, 1], [], []>} : vector<8x32xbf16>, vector<32x128xbf16>, vector<8x128xf32> -> vector<8x128xf32>
    %372 = vector.broadcast %5 : vector<1x128xf32> to vector<8x128xf32>
    %373 = arith.addf %371, %372 : vector<8x128xf32>
    %c0_i32_101 = arith.constant 0 : i32
    %374 = arith.cmpi sge, %369, %c0_i32_101 : i32
    %c8_i32_102 = arith.constant 8 : i32
    %375 = arith.cmpi slt, %369, %c8_i32_102 : i32
    %376 = arith.andi %374, %375 : i1
    %377 = arith.truncf %340 : vector<8x32xf32> to vector<8x32xbf16>
    %cst_103 = arith.constant dense<0.000000e+00> : vector<8x128xf32>
    %378 = tpu.matmul %377, %3, %cst_103 {dimension_numbers = #tpu.dot_dimension_numbers<[1], [0], [0], [1], [0, 0, 1, 1], [], []>} : vector<8x32xbf16>, vector<32x128xbf16>, vector<8x128xf32> -> vector<8x128xf32>
    %379 = arith.addf %373, %378 : vector<8x128xf32>
    %380 = arith.negf %379 : vector<8x128xf32>
    %381 = math.exp %380 : vector<8x128xf32>
    %cst_104 = arith.constant 1.000000e+00 : f32
    %382 = vector.broadcast %cst_104 : f32 to vector<8x128xf32>
    %383 = arith.addf %382, %381 : vector<8x128xf32>
    %384 = arith.divf %382, %383 : vector<8x128xf32>
    %385 = math.tanh %379 : vector<8x128xf32>
    %386 = vector.extract_strided_slice %384 {offsets = [0, 0], sizes = [8, 32], strides = [1, 1]} : vector<8x128xf32> to vector<8x32xf32>
    %387 = vector.extract_strided_slice %384 {offsets = [0, 32], sizes = [8, 32], strides = [1, 1]} : vector<8x128xf32> to vector<8x32xf32>
    %388 = vector.extract_strided_slice %385 {offsets = [0, 64], sizes = [8, 32], strides = [1, 1]} : vector<8x128xf32> to vector<8x32xf32>
    %389 = vector.extract_strided_slice %384 {offsets = [0, 96], sizes = [8, 32], strides = [1, 1]} : vector<8x128xf32> to vector<8x32xf32>
    %390 = arith.mulf %387, %341 : vector<8x32xf32>
    %391 = arith.mulf %386, %388 : vector<8x32xf32>
    %392 = arith.addf %390, %391 : vector<8x32xf32>
    %393 = math.tanh %392 : vector<8x32xf32>
    %394 = arith.mulf %389, %393 : vector<8x32xf32>
    %395 = arith.select %376, %394, %340 : vector<8x32xf32>
    %396 = arith.select %376, %392, %341 : vector<8x32xf32>
    %c7_i32_105 = arith.constant 7 : i32
    %c0_i32_106 = arith.constant 0 : i32
    %397 = arith.subi %c7_i32_105, %c0_i32_106 : i32
    %c7_i32_107 = arith.constant 7 : i32
    %398 = arith.minsi %397, %c7_i32_107 : i32
    %c8_i32_108 = arith.constant 8 : i32
    %399 = arith.muli %398, %c8_i32_108 : i32
    %400 = tpu.assume_multiple %399, 8 : i32
    %401 = arith.index_cast %400 : i32 to index
    %c0_109 = arith.constant 0 : index
    %402 = vector.load %arg10[%401, %c0_109] : memref<64x128xf32, #tpu.memory_space<vmem>>, vector<8x128xf32>
    %c8_i32_110 = arith.constant 8 : i32
    %403 = arith.cmpi slt, %397, %c8_i32_110 : i32
    %404 = arith.truncf %367 : vector<8x32xf32> to vector<8x32xbf16>
    %cst_111 = arith.constant dense<0.000000e+00> : vector<8x128xf32>
    %405 = tpu.matmul %404, %2, %cst_111 {dimension_numbers = #tpu.dot_dimension_numbers<[1], [0], [0], [1], [0, 0, 1, 1], [], []>} : vector<8x32xbf16>, vector<32x128xbf16>, vector<8x128xf32> -> vector<8x128xf32>
    %406 = arith.addf %402, %405 : vector<8x128xf32>
    %407 = arith.negf %406 : vector<8x128xf32>
    %408 = math.exp %407 : vector<8x128xf32>
    %cst_112 = arith.constant 1.000000e+00 : f32
    %409 = vector.broadcast %cst_112 : f32 to vector<8x128xf32>
    %410 = arith.addf %409, %408 : vector<8x128xf32>
    %411 = arith.divf %409, %410 : vector<8x128xf32>
    %412 = math.tanh %406 : vector<8x128xf32>
    %413 = vector.extract_strided_slice %411 {offsets = [0, 0], sizes = [8, 32], strides = [1, 1]} : vector<8x128xf32> to vector<8x32xf32>
    %414 = vector.extract_strided_slice %411 {offsets = [0, 32], sizes = [8, 32], strides = [1, 1]} : vector<8x128xf32> to vector<8x32xf32>
    %415 = vector.extract_strided_slice %412 {offsets = [0, 64], sizes = [8, 32], strides = [1, 1]} : vector<8x128xf32> to vector<8x32xf32>
    %416 = vector.extract_strided_slice %411 {offsets = [0, 96], sizes = [8, 32], strides = [1, 1]} : vector<8x128xf32> to vector<8x32xf32>
    %417 = arith.mulf %414, %368 : vector<8x32xf32>
    %418 = arith.mulf %413, %415 : vector<8x32xf32>
    %419 = arith.addf %417, %418 : vector<8x32xf32>
    %420 = math.tanh %419 : vector<8x32xf32>
    %421 = arith.mulf %416, %420 : vector<8x32xf32>
    %422 = arith.select %403, %421, %367 : vector<8x32xf32>
    %423 = arith.select %403, %419, %368 : vector<8x32xf32>
    %c1_i32_113 = arith.constant 1 : i32
    %424 = arith.subi %c7_i32_105, %c1_i32_113 : i32
    %425 = arith.truncf %367 : vector<8x32xf32> to vector<8x32xbf16>
    %cst_114 = arith.constant dense<0.000000e+00> : vector<8x128xf32>
    %426 = tpu.matmul %425, %1, %cst_114 {dimension_numbers = #tpu.dot_dimension_numbers<[1], [0], [0], [1], [0, 0, 1, 1], [], []>} : vector<8x32xbf16>, vector<32x128xbf16>, vector<8x128xf32> -> vector<8x128xf32>
    %427 = vector.broadcast %5 : vector<1x128xf32> to vector<8x128xf32>
    %428 = arith.addf %426, %427 : vector<8x128xf32>
    %c0_i32_115 = arith.constant 0 : i32
    %429 = arith.cmpi sge, %424, %c0_i32_115 : i32
    %c8_i32_116 = arith.constant 8 : i32
    %430 = arith.cmpi slt, %424, %c8_i32_116 : i32
    %431 = arith.andi %429, %430 : i1
    %432 = arith.truncf %395 : vector<8x32xf32> to vector<8x32xbf16>
    %cst_117 = arith.constant dense<0.000000e+00> : vector<8x128xf32>
    %433 = tpu.matmul %432, %3, %cst_117 {dimension_numbers = #tpu.dot_dimension_numbers<[1], [0], [0], [1], [0, 0, 1, 1], [], []>} : vector<8x32xbf16>, vector<32x128xbf16>, vector<8x128xf32> -> vector<8x128xf32>
    %434 = arith.addf %428, %433 : vector<8x128xf32>
    %435 = arith.negf %434 : vector<8x128xf32>
    %436 = math.exp %435 : vector<8x128xf32>
    %cst_118 = arith.constant 1.000000e+00 : f32
    %437 = vector.broadcast %cst_118 : f32 to vector<8x128xf32>
    %438 = arith.addf %437, %436 : vector<8x128xf32>
    %439 = arith.divf %437, %438 : vector<8x128xf32>
    %440 = math.tanh %434 : vector<8x128xf32>
    %441 = vector.extract_strided_slice %439 {offsets = [0, 0], sizes = [8, 32], strides = [1, 1]} : vector<8x128xf32> to vector<8x32xf32>
    %442 = vector.extract_strided_slice %439 {offsets = [0, 32], sizes = [8, 32], strides = [1, 1]} : vector<8x128xf32> to vector<8x32xf32>
    %443 = vector.extract_strided_slice %440 {offsets = [0, 64], sizes = [8, 32], strides = [1, 1]} : vector<8x128xf32> to vector<8x32xf32>
    %444 = vector.extract_strided_slice %439 {offsets = [0, 96], sizes = [8, 32], strides = [1, 1]} : vector<8x128xf32> to vector<8x32xf32>
    %445 = arith.mulf %442, %396 : vector<8x32xf32>
    %446 = arith.mulf %441, %443 : vector<8x32xf32>
    %447 = arith.addf %445, %446 : vector<8x32xf32>
    %448 = math.tanh %447 : vector<8x32xf32>
    %449 = arith.mulf %444, %448 : vector<8x32xf32>
    %450 = arith.select %431, %449, %395 : vector<8x32xf32>
    %451 = arith.select %431, %447, %396 : vector<8x32xf32>
    %c8_i32_119 = arith.constant 8 : i32
    %c0_i32_120 = arith.constant 0 : i32
    %452 = arith.subi %c8_i32_119, %c0_i32_120 : i32
    %c7_i32_121 = arith.constant 7 : i32
    %453 = arith.minsi %452, %c7_i32_121 : i32
    %c8_i32_122 = arith.constant 8 : i32
    %454 = arith.muli %453, %c8_i32_122 : i32
    %455 = tpu.assume_multiple %454, 8 : i32
    %456 = arith.index_cast %455 : i32 to index
    %c0_123 = arith.constant 0 : index
    %457 = vector.load %arg10[%456, %c0_123] : memref<64x128xf32, #tpu.memory_space<vmem>>, vector<8x128xf32>
    %c8_i32_124 = arith.constant 8 : i32
    %458 = arith.cmpi slt, %452, %c8_i32_124 : i32
    %459 = arith.truncf %422 : vector<8x32xf32> to vector<8x32xbf16>
    %cst_125 = arith.constant dense<0.000000e+00> : vector<8x128xf32>
    %460 = tpu.matmul %459, %2, %cst_125 {dimension_numbers = #tpu.dot_dimension_numbers<[1], [0], [0], [1], [0, 0, 1, 1], [], []>} : vector<8x32xbf16>, vector<32x128xbf16>, vector<8x128xf32> -> vector<8x128xf32>
    %461 = arith.addf %457, %460 : vector<8x128xf32>
    %462 = arith.negf %461 : vector<8x128xf32>
    %463 = math.exp %462 : vector<8x128xf32>
    %cst_126 = arith.constant 1.000000e+00 : f32
    %464 = vector.broadcast %cst_126 : f32 to vector<8x128xf32>
    %465 = arith.addf %464, %463 : vector<8x128xf32>
    %466 = arith.divf %464, %465 : vector<8x128xf32>
    %467 = math.tanh %461 : vector<8x128xf32>
    %468 = vector.extract_strided_slice %466 {offsets = [0, 0], sizes = [8, 32], strides = [1, 1]} : vector<8x128xf32> to vector<8x32xf32>
    %469 = vector.extract_strided_slice %466 {offsets = [0, 32], sizes = [8, 32], strides = [1, 1]} : vector<8x128xf32> to vector<8x32xf32>
    %470 = vector.extract_strided_slice %467 {offsets = [0, 64], sizes = [8, 32], strides = [1, 1]} : vector<8x128xf32> to vector<8x32xf32>
    %471 = vector.extract_strided_slice %466 {offsets = [0, 96], sizes = [8, 32], strides = [1, 1]} : vector<8x128xf32> to vector<8x32xf32>
    %472 = arith.mulf %469, %423 : vector<8x32xf32>
    %473 = arith.mulf %468, %470 : vector<8x32xf32>
    %474 = arith.addf %472, %473 : vector<8x32xf32>
    %475 = math.tanh %474 : vector<8x32xf32>
    %476 = arith.mulf %471, %475 : vector<8x32xf32>
    %477 = arith.select %458, %476, %422 : vector<8x32xf32>
    %478 = arith.select %458, %474, %423 : vector<8x32xf32>
    %c1_i32_127 = arith.constant 1 : i32
    %479 = arith.subi %c8_i32_119, %c1_i32_127 : i32
    %480 = arith.truncf %422 : vector<8x32xf32> to vector<8x32xbf16>
    %cst_128 = arith.constant dense<0.000000e+00> : vector<8x128xf32>
    %481 = tpu.matmul %480, %1, %cst_128 {dimension_numbers = #tpu.dot_dimension_numbers<[1], [0], [0], [1], [0, 0, 1, 1], [], []>} : vector<8x32xbf16>, vector<32x128xbf16>, vector<8x128xf32> -> vector<8x128xf32>
    %482 = vector.broadcast %5 : vector<1x128xf32> to vector<8x128xf32>
    %483 = arith.addf %481, %482 : vector<8x128xf32>
    %c0_i32_129 = arith.constant 0 : i32
    %484 = arith.cmpi sge, %479, %c0_i32_129 : i32
    %c8_i32_130 = arith.constant 8 : i32
    %485 = arith.cmpi slt, %479, %c8_i32_130 : i32
    %486 = arith.andi %484, %485 : i1
    %487 = arith.truncf %450 : vector<8x32xf32> to vector<8x32xbf16>
    %cst_131 = arith.constant dense<0.000000e+00> : vector<8x128xf32>
    %488 = tpu.matmul %487, %3, %cst_131 {dimension_numbers = #tpu.dot_dimension_numbers<[1], [0], [0], [1], [0, 0, 1, 1], [], []>} : vector<8x32xbf16>, vector<32x128xbf16>, vector<8x128xf32> -> vector<8x128xf32>
    %489 = arith.addf %483, %488 : vector<8x128xf32>
    %490 = arith.negf %489 : vector<8x128xf32>
    %491 = math.exp %490 : vector<8x128xf32>
    %cst_132 = arith.constant 1.000000e+00 : f32
    %492 = vector.broadcast %cst_132 : f32 to vector<8x128xf32>
    %493 = arith.addf %492, %491 : vector<8x128xf32>
    %494 = arith.divf %492, %493 : vector<8x128xf32>
    %495 = math.tanh %489 : vector<8x128xf32>
    %496 = vector.extract_strided_slice %494 {offsets = [0, 0], sizes = [8, 32], strides = [1, 1]} : vector<8x128xf32> to vector<8x32xf32>
    %497 = vector.extract_strided_slice %494 {offsets = [0, 32], sizes = [8, 32], strides = [1, 1]} : vector<8x128xf32> to vector<8x32xf32>
    %498 = vector.extract_strided_slice %495 {offsets = [0, 64], sizes = [8, 32], strides = [1, 1]} : vector<8x128xf32> to vector<8x32xf32>
    %499 = vector.extract_strided_slice %494 {offsets = [0, 96], sizes = [8, 32], strides = [1, 1]} : vector<8x128xf32> to vector<8x32xf32>
    %500 = arith.mulf %497, %451 : vector<8x32xf32>
    %501 = arith.mulf %496, %498 : vector<8x32xf32>
    %502 = arith.addf %500, %501 : vector<8x32xf32>
    %503 = math.tanh %502 : vector<8x32xf32>
    %504 = arith.mulf %499, %503 : vector<8x32xf32>
    %505 = arith.select %486, %504, %450 : vector<8x32xf32>
    %506 = arith.select %486, %502, %451 : vector<8x32xf32>
    %c9_i32 = arith.constant 9 : i32
    %507 = arith.truncf %505 : vector<8x32xf32> to vector<8x32xbf16>
    %c0_133 = arith.constant 0 : index
    %c0_134 = arith.constant 0 : index
    %508 = vector.load %arg7[%c0_133, %c0_134] : memref<32x128xbf16, #tpu.memory_space<vmem>>, vector<32x128xbf16>
    %cst_135 = arith.constant dense<0.000000e+00> : vector<8x128xf32>
    %509 = tpu.matmul %507, %508, %cst_135 {dimension_numbers = #tpu.dot_dimension_numbers<[1], [0], [0], [1], [0, 0, 1, 1], [], []>} : vector<8x32xbf16>, vector<32x128xbf16>, vector<8x128xf32> -> vector<8x128xf32>
    %c0_136 = arith.constant 0 : index
    %c0_137 = arith.constant 0 : index
    %510 = vector.load %arg8[%c0_136, %c0_137] : memref<1x128xf32, #tpu.memory_space<vmem>>, vector<1x128xf32>
    %511 = vector.broadcast %510 : vector<1x128xf32> to vector<8x128xf32>
    %512 = arith.addf %509, %511 : vector<8x128xf32>
    %c0_138 = arith.constant 0 : index
    %c0_139 = arith.constant 0 : index
    %513 = vector.load %arg9[%c0_138, %c0_139] : memref<8x128xf32, #tpu.memory_space<vmem>>, vector<8x128xf32>
    tpu.vector_store %arg9[%c0_138, %c0_139], %512 {strides = array<i32>} : memref<8x128xf32, #tpu.memory_space<vmem>>, vector<8x128xf32>,
    return
  }
}

</mosaic_0001>

<bundles_post_ra>
// kernel: tpu_custom_call.1
= control target key start
LH: loop header
LB: loop body
LE: loop exit
PB: predicated region body
PF: predicated region fallthrough
CT: control target
= control target key end

     0   :  { %14 = vsyncpa [#allocation4], 0  ;;  %s1985_s0 = inlined_call_operand.vmem [shape: bf16[64,16], index: 0, kind: input, shape index: {}]   ;;  %s1986_s1 = inlined_call_operand.vmem [shape: bf16[16,128], index: 1, kind: input, shape index: {}]   ;;  %s1987_s2 = inlined_call_operand.vmem [shape: bf16[32,128], index: 2, kind: input, shape index: {}]   ;;  %s1988_s3 = inlined_call_operand.vmem [shape: f32[1,128], index: 3, kind: input, shape index: {}]   ;;  %s1989_s4 = inlined_call_operand.vmem [shape: bf16[32,128], index: 4, kind: input, shape index: {}]   ;;  %s1990_s5 = inlined_call_operand.hbm [shape: bf16[32,128], index: 5, kind: input, shape index: {}]   ;;  %s1991_s6 = inlined_call_operand.vmem [shape: f32[1,128], index: 6, kind: input, shape index: {}]   ;;  %s1992_s7 = inlined_call_operand.hbm [shape: bf16[32,128], index: 7, kind: input, shape index: {}]   ;;  %s1993_s8 = inlined_call_operand.vmem [shape: f32[1,128], index: 8, kind: input, shape index: {}]   ;;  %s1994_s9 = inlined_call_operand.hbm [shape: f32[8,128], index: 9, kind: output, shape index: {}]  }
   0x1   :  { %15 = vsyncpa [#allocation7], 0 }
   0x2   :  { %16 = vsyncpa [#allocation5], 0  ;;  %s31_s11 = sshll.u32 %s1990_s5, 4  ;;  %s1637_s12 = smov [#allocation3]   ;;  %s32_s11 = int_to_ptr.hbm [resolvable:$true] %s31_s11 }
   0x3   :  { %s33_s13 = sshll.u32 %s1637_s12, 4  ;;  %s46_s16 = sshll.u32 %s1992_s7, 4  ;;  %s34_s13 = int_to_ptr.vmem [resolvable:$true] %s33_s13  ;;  %s47_s16 = int_to_ptr.hbm [resolvable:$true] %s46_s16 }
   0x4   :  { %s1638_s17 = smov 64   ;;  %s1639_s18 = smov 4  }
   0x5   :  { %39 = dma.hbm_to_vmem [thread:$0]  %s32_s11, 256, %s34_s13, [#allocation4], %s1638_s17, %s1638_s17, %s1639_s18  }
   0x6   :  { %s1640_s19 = smov [#allocation6]  }
   0x7   :  { %s48_s20 = sshll.u32 %s1640_s19, 4  ;;  %s49_s20 = int_to_ptr.vmem [resolvable:$true] %s48_s20 }
   0x8   :  { %54 = dma.hbm_to_vmem [thread:$0]  %s47_s16, 256, %s49_s20, [#allocation7], %s1638_s17, %s1638_s17, %s1639_s18  }
   0x9   :  { %1631 = dma.done.wait [#allocation4], 256  }
   0xa   :  { %1632 = vsyncadd [#allocation4], 4294967040 }
   0xb   :  { %1633 = dma.done.wait [#allocation7], 256  }
   0xc   :  { %1634 = vsyncadd [#allocation7], 4294967040  ;;  %v1406_v0 = vld [vmem:[%s1986_s1] sm:$0xff]  ;;  %v1710_v1 = vld [vmem:[%s1987_s2 + $0x8] sm:$0xff]  ;;  %vm119_vm0 = vcmask 130048   ;;  %v1641_v4 = vmov 0  }
   0xd   :  { %v1413_v2 = vld [vmem:[%s1985_s0] sm:$0xff]  ;;  %139 = vmatpush.bf16.msra.mxu0 %v1406_v0  ;;  %192 = vmatpush.bf16.msra.mxu1 %v1710_v1  ;;  %v1742_v31 = vld [vmem:[%s1989_s4 + $0x8] sm:$0xff]  ;;  %vm182_vm5 = vcmask 261120   ;;  %s1643_s21 = smov [#allocation8]   ;;  %s1300_s23 = sshll.u32 %s1994_s9, 4  ;;  %s1301_s23 = int_to_ptr.hbm [resolvable:$true] %s1300_s23 }
   0xe   :  { %v1719_v3 = vld [vmem:[%s1987_s2] sm:$0xff]  ;;  %252 = vmatpush.bf16.msra.mxu2 %v1710_v1  ;;  %s1642_s2 = smov 32   ;;  %318 = vmatpush.bf16.msra.mxu3 %v1742_v31  ;;  %v1754_v36 = vld [vmem:[#allocation3 + $0x8] sm:$0xff]  ;;  %s1298_s7 = sshll.u32 %s1643_s21, 4  ;;  %s1299_s7 = int_to_ptr.vmem [resolvable:$true] %s1298_s7 }
   0xf   :  { %v1730_v5 = vld [vmem:[%s1988_s3] ss:$0 sm:$0xff] }
  0x10   :  { %1331 = vmatmul.msk.bf16.vlgmr.msra.gmra.mxu0 %vm119_vm0, %v1413_v2  ;;  %v1748_v32 = vld [vmem:[%s1989_s4] sm:$0xff] }
  0x11   :  { %193 = vmatpush.bf16.msra.mxu1 %v1719_v3  ;;  %v1757_v37 = vld [vmem:[#allocation3] sm:$0xff]  ;;  %736 = vmatpush.bf16.msrb.mxu0 %v1754_v36 }
  0x12   :  { %253 = vmatpush.bf16.msra.mxu2 %v1719_v3  ;;  %319 = vmatpush.bf16.msra.mxu3 %v1748_v32  ;;  %v1778_v43 = vld [vmem:[%s1991_s6] ss:$0 sm:$0xff] }
  0x14   :  { %194 = vmatmul.bf16.vlgmr.msra.gmra.mxu1 %v1641_v4 }
  0x15   :  { %343 = vmatpush.bf16.msrb.mxu1 %v1754_v36  ;;  %737 = vmatpush.bf16.msrb.mxu0 %v1757_v37 }
  0x16   :  { %403 = vmatpush.bf16.msrb.mxu2 %v1710_v1  ;;  %454 = vmatpush.bf16.msrb.mxu3 %v1742_v31 }
  0x19   :  { %344 = vmatpush.bf16.msrb.mxu1 %v1757_v37  ;;  %927 = vmatpush.bf16.msra.mxu0 %v1710_v1 }
  0x1a   :  { %404 = vmatpush.bf16.msrb.mxu2 %v1719_v3  ;;  %455 = vmatpush.bf16.msrb.mxu3 %v1748_v32 }
  0x1d   :  { %474 = vmatpush.bf16.msra.mxu1 %v1754_v36  ;;  %928 = vmatpush.bf16.msra.mxu0 %v1719_v3 }
  0x21   :  { %475 = vmatpush.bf16.msra.mxu1 %v1757_v37 }
  0x24   :  { %345 = vmatmul.bf16.vlgmr.msrb.gmra.mxu1 %v1641_v4 }
  0x25   :  { %605 = vmatpush.bf16.msrb.mxu1 %v1754_v36 }
  0x29   :  { %606 = vmatpush.bf16.msrb.mxu1 %v1757_v37 }
  0x8d   :  { %v141_v6 = vpop.f32.mrf.mxu0 }
  0x8e   :  { %v142_v7 = vadd.f32 %v1730_v5, %v141_v6 }
  0x91   :  { %v195_v8 = vpop.f32.mrf.mxu1 }
  0x92   :  { %v199_v9 = vadd.f32 %v195_v8, %v142_v7 }
  0x94   :  { %1429 = vtanh.f32 %v199_v9  ;;  %v1343_v12 = vmul.f32 -1.442695, %v199_v9 }
  0x95   :  { %v143_v41 = vpop.f32.mrf.mxu0 }
  0x96   :  { %1431 = vpow2.f32 %v1343_v12  ;;  %v144_v42 = vadd.f32 %v1730_v5, %v143_v41 }
  0x99   :  { %v197_v10 = vpop.f32.mrf.mxu1 }
  0x9a   :  { %v1430_v11 = vpop.eup %1429 }
  0x9b   :  { %222 = vrot.lane.b32.xlu0 %v1430_v11, %s1638_s17 }
  0x9c   :  { %v1432_v13 = vpop.eup %1431 }
  0x9d   :  { %v203_v14 = vadd.f32 1.0, %v1432_v13 }
  0x9f   :  { %1433 = vrcp.f32 %v203_v14  ;;  %v215_v20 = vand.u32 2147483648, %v203_v14  ;;  %vm209_vm2 = vweird.f32 %v203_v14  ;;  %v213_v21 = vand.u32 2147483647, %v203_v14 }
  0xa1   :  { %v216_v23 = vor.u32 1.1754944e-38, %v215_v20  ;;  %vm214_vm4 = vcmp.eq.f32.partialorder %v213_v21, 8.507059e+37  ;;  %v346_v39 = vpop.f32.mrf.mxu1 }
  0xa5   :  { %v1434_v15 = vpop.eup %1433 }
  0xa6   :  { %v205_v16 = vmul.f32 %v1434_v15, %v203_v14  ;;  %vm210_vm1 = vweird.f32 %v1434_v15 }
  0xa7   :  { %vm211_vm3 = vmor %vm209_vm2, %vm210_vm1 }
  0xa8   :  { %v206_v17 = vsub.f32 1.0, %v205_v16 }
  0xa9   :  { %v348_v40 = vpop.f32.mrf.mxu1 }
  0xaa   :  { %v207_v18 = vmul.f32 %v1434_v15, %v206_v17 }
  0xac   :  { %v208_v19 = vadd.f32 %v1434_v15, %v207_v18 }
  0xae   :  { %v212_v22 = vsel %vm211_vm3, %v1434_v15, %v208_v19 }
  0xaf   :  { %v217_v25 = vsel %vm214_vm4, %v216_v23, %v212_v22 }
  0xb0   :  { %v220_v27 = vmul.f32 0.0, %v217_v25 }
 0x10d   :  { %v223_v24 = vpop.permute.xlu0 %222 }
 0x10e   :  { %v225_v26 = vmul.f32 %v223_v24, %v217_v25 }
 0x110   :  { %227 = vrot.lane.b32.xlu0 %v225_v26, %s1642_s2 }
 0x182   :  { %v228_v28 = vpop.permute.xlu0 %227 }
 0x183   :  { %v1735_v29 = vadd.f32 %v228_v28, %v220_v27 }
 0x185   :  { %1435 = vtanh.f32 %v1735_v29 }
 0x18b   :  { %v1436_v30 = vpop.eup %1435 }
 0x18c   :  { %233 = vrot.lane.b32.xlu1 %v1436_v30, %s1638_s17 }
 0x1fe   :  { %v234_v33 = vpop.permute.xlu1 %233 }
 0x1ff   :  { %v236_v34 = vmul.f32 %v234_v33, %v217_v25 }
 0x201   :  { %v239_v35 = vpack.c.bf16 %v236_v34, %v236_v34 }
 0x203   :  { %241 = vrot.lane.b32.xlu1 %v239_v35, %s1642_s2  ;;  %v1414_v35 = vld [vmem:[%s1985_s0 + $0x8] sm:$0xff] }
 0x204   :  { %1332 = vmatmul.msk.bf16.gmra.mxu0 %vm119_vm0, %v1414_v35 }
 0x275   :  { %v242_v38 = vpop.permute.xlu1 %241 }
 0x276   :  { %1344 = vmatmul.msk.bf16.vlgmr.msra.gmra.mxu2 %vm182_vm5, %v242_v38  ;;  %1354 = vmatmul.msk.bf16.vlgmr.msra.gmra.mxu3 %vm182_vm5, %v242_v38 }
 0x277   :  { %534 = vmatpush.bf16.msra.mxu2 %v1710_v1  ;;  %585 = vmatpush.bf16.msra.mxu3 %v1742_v31 }
 0x27b   :  { %535 = vmatpush.bf16.msra.mxu2 %v1719_v3  ;;  %586 = vmatpush.bf16.msra.mxu3 %v1748_v32 }
 0x2f9   :  { %v255_v44 = vpop.f32.mrf.mxu2  ;;  %v321_v45 = vpop.f32.mrf.mxu3 }
 0x2fa   :  { %v259_v46 = vadd.f32 %v255_v44, %v144_v42  ;;  %v322_v47 = vadd.f32 %v1778_v43, %v321_v45  ;;  %v146_v44 = vpop.f32.mrf.mxu0 }
 0x2fb   :  { %v147_v45 = vadd.f32 %v1730_v5, %v146_v44 }
 0x2fc   :  { %1437 = vtanh.f32 %v259_v46  ;;  %v350_v48 = vadd.f32 %v346_v39, %v322_v47  ;;  %v1345_v53 = vmul.f32 -1.442695, %v259_v46 }
 0x2fe   :  { %1439 = vtanh.f32 %v350_v48  ;;  %v1363_v54 = vmul.f32 -1.442695, %v350_v48 }
 0x2ff   :  { %1441 = vpow2.f32 %v1345_v53 }
 0x300   :  { %1443 = vpow2.f32 %v1363_v54 }
 0x301   :  { %v257_v49 = vpop.f32.mrf.mxu2  ;;  %v323_v50 = vpop.f32.mrf.mxu3 }
 0x302   :  { %v1438_v51 = vpop.eup %1437 }
 0x303   :  { %282 = vrot.lane.b32.xlu2 %v1438_v51, %s1638_s17 }
 0x304   :  { %v1440_v52 = vpop.eup %1439 }
 0x305   :  { %v1442_v55 = vpop.eup %1441 }
 0x306   :  { %v263_v56 = vadd.f32 1.0, %v1442_v55  ;;  %v1444_v57 = vpop.eup %1443 }
 0x307   :  { %v354_v58 = vadd.f32 1.0, %v1444_v57 }
 0x308   :  { %1445 = vrcp.f32 %v263_v56  ;;  %v275_v6 = vand.u32 2147483648, %v263_v56  ;;  %vm269_vm7 = vweird.f32 %v263_v56  ;;  %v273_v7 = vand.u32 2147483647, %v263_v56 }
 0x309   :  { %1447 = vrcp.f32 %v354_v58  ;;  %v366_v15 = vand.u32 2147483648, %v354_v58  ;;  %vm360_vm11 = vweird.f32 %v354_v58  ;;  %v364_v16 = vand.u32 2147483647, %v354_v58 }
 0x30a   :  { %v276_v10 = vor.u32 1.1754944e-38, %v275_v6  ;;  %vm274_vm9 = vcmp.eq.f32.partialorder %v273_v7, 8.507059e+37 }
 0x30b   :  { %373 = vrot.lane.b32.xlu2 %v1440_v52, %s1638_s17  ;;  %v367_v18 = vor.u32 1.1754944e-38, %v366_v15  ;;  %vm365_vm13 = vcmp.eq.f32.partialorder %v364_v16, 8.507059e+37 }
 0x30e   :  { %v1446_v59 = vpop.eup %1445 }
 0x30f   :  { %v265_v60 = vmul.f32 %v1446_v59, %v263_v56  ;;  %v1448_v62 = vpop.eup %1447  ;;  %vm270_vm6 = vweird.f32 %v1446_v59 }
 0x310   :  { %v356_v0 = vmul.f32 %v1448_v62, %v354_v58  ;;  %vm271_vm8 = vmor %vm269_vm7, %vm270_vm6  ;;  %vm361_vm10 = vweird.f32 %v1448_v62 }
 0x311   :  { %v266_v61 = vsub.f32 1.0, %v265_v60  ;;  %vm362_vm12 = vmor %vm360_vm11, %vm361_vm10 }
 0x312   :  { %v357_v4 = vsub.f32 1.0, %v356_v0 }
 0x313   :  { %v267_v63 = vmul.f32 %v1446_v59, %v266_v61 }
 0x314   :  { %v358_v9 = vmul.f32 %v1448_v62, %v357_v4 }
 0x315   :  { %v268_v2 = vadd.f32 %v1446_v59, %v267_v63 }
 0x316   :  { %v359_v14 = vadd.f32 %v1448_v62, %v358_v9 }
 0x317   :  { %v272_v8 = vsel %vm271_vm8, %v1446_v59, %v268_v2 }
 0x318   :  { %v277_v12 = vsel %vm274_vm9, %v276_v10, %v272_v8  ;;  %v363_v17 = vsel %vm362_vm12, %v1448_v62, %v359_v14 }
 0x319   :  { %v368_v19 = vsel %vm365_vm13, %v367_v18, %v363_v17  ;;  %v280_v22 = vmul.f32 %v277_v12, %v1735_v29 }
 0x31a   :  { %v371_v25 = vmul.f32 0.0, %v368_v19 }
 0x35d   :  { %v283_v11 = vpop.permute.xlu2 %282 }
 0x35e   :  { %v285_v13 = vmul.f32 %v283_v11, %v277_v12 }
 0x360   :  { %287 = vrot.lane.b32.xlu0 %v285_v13, %s1642_s2 }
 0x365   :  { %v374_v20 = vpop.permute.xlu2 %373 }
 0x366   :  { %v376_v21 = vmul.f32 %v374_v20, %v368_v19 }
 0x368   :  { %378 = vrot.lane.b32.xlu1 %v376_v21, %s1642_s2 }
 0x3d2   :  { %v288_v23 = vpop.permute.xlu0 %287 }
 0x3d3   :  { %v1786_v24 = vadd.f32 %v288_v23, %v280_v22 }
 0x3d5   :  { %1449 = vtanh.f32 %v1786_v24 }
 0x3da   :  { %v379_v26 = vpop.permute.xlu1 %378 }
 0x3db   :  { %v1450_v27 = vpop.eup %1449  ;;  %v1789_v28 = vadd.f32 %v379_v26, %v371_v25 }
 0x3dc   :  { %293 = vrot.lane.b32.xlu2 %v1450_v27, %s1638_s17 }
 0x3dd   :  { %1451 = vtanh.f32 %v1789_v28 }
 0x3e3   :  { %v1452_v30 = vpop.eup %1451 }
 0x3e4   :  { %384 = vrot.lane.b32.xlu0 %v1452_v30, %s1638_s17 }
 0x436   :  { %v294_v33 = vpop.permute.xlu2 %293 }
 0x437   :  { %v296_v34 = vmul.f32 %v294_v33, %v277_v12 }
 0x439   :  { %v390_v29 = vpack.c.bf16 %v296_v34, %v296_v34 }
 0x43b   :  { %392 = vrot.lane.b32.xlu1 %v390_v29, %s1642_s2 }
 0x456   :  { %v385_v38 = vpop.permute.xlu0 %384 }
 0x457   :  { %v387_v39 = vmul.f32 %v385_v38, %v368_v19 }
 0x459   :  { %v461_v40 = vpack.c.bf16 %v387_v39, %v387_v39 }
 0x45b   :  { %463 = vrot.lane.b32.xlu2 %v461_v40, %s1642_s2 }
 0x4ad   :  { %v393_v41 = vpop.permute.xlu1 %392 }
 0x4ae   :  { %1364 = vmatmul.msk.bf16.vlgmr.msrb.gmra.mxu2 %vm182_vm5, %v393_v41  ;;  %1366 = vmatmul.msk.bf16.vlgmr.msrb.gmra.mxu3 %vm182_vm5, %v393_v41 }
 0x4af   :  { %665 = vmatpush.bf16.msrb.mxu2 %v1710_v1  ;;  %716 = vmatpush.bf16.msrb.mxu3 %v1742_v31 }
 0x4b3   :  { %666 = vmatpush.bf16.msrb.mxu2 %v1719_v3  ;;  %717 = vmatpush.bf16.msrb.mxu3 %v1748_v32 }
 0x4b5   :  { %v464_v42 = vpop.permute.xlu2 %463 }
 0x4b6   :  { %1367 = vmatmul.msk.bf16.vlgmr.msra.gmra.mxu1 %vm182_vm5, %v464_v42 }
 0x4b7   :  { %796 = vmatpush.bf16.msra.mxu1 %v1710_v1 }
 0x4bb   :  { %797 = vmatpush.bf16.msra.mxu1 %v1719_v3 }
 0x531   :  { %v406_v46 = vpop.f32.mrf.mxu2  ;;  %v457_v47 = vpop.f32.mrf.mxu3 }
 0x532   :  { %v410_v48 = vadd.f32 %v406_v46, %v147_v45  ;;  %v458_v49 = vadd.f32 %v1778_v43, %v457_v47  ;;  %v148_v47 = vpop.f32.mrf.mxu0 }
 0x533   :  { %v477_v50 = vpop.f32.mrf.mxu1 }
 0x534   :  { %1453 = vtanh.f32 %v410_v48  ;;  %v481_v51 = vadd.f32 %v477_v50, %v458_v49  ;;  %v1365_v57 = vmul.f32 -1.442695, %v410_v48  ;;  %v149_v49 = vadd.f32 %v1730_v5, %v148_v47 }
 0x536   :  { %1455 = vtanh.f32 %v481_v51  ;;  %v1368_v58 = vmul.f32 -1.442695, %v481_v51 }
 0x537   :  { %1457 = vpow2.f32 %v1365_v57 }
 0x538   :  { %1459 = vpow2.f32 %v1368_v58 }
 0x539   :  { %v408_v52 = vpop.f32.mrf.mxu2  ;;  %v459_v53 = vpop.f32.mrf.mxu3 }
 0x53a   :  { %v1454_v54 = vpop.eup %1453 }
 0x53b   :  { %v479_v55 = vpop.f32.mrf.mxu1  ;;  %433 = vrot.lane.b32.xlu0 %v1454_v54, %s1638_s17 }
 0x53c   :  { %v1456_v56 = vpop.eup %1455 }
 0x53d   :  { %504 = vrot.lane.b32.xlu1 %v1456_v56, %s1638_s17  ;;  %v1458_v59 = vpop.eup %1457 }
 0x53e   :  { %v1460_v60 = vpop.eup %1459  ;;  %v414_v61 = vadd.f32 1.0, %v1458_v59 }
 0x53f   :  { %v485_v62 = vadd.f32 1.0, %v1460_v60 }
 0x540   :  { %1461 = vrcp.f32 %v414_v61  ;;  %v426_v11 = vand.u32 2147483648, %v414_v61  ;;  %vm420_vm15 = vweird.f32 %v414_v61  ;;  %v424_v12 = vand.u32 2147483647, %v414_v61 }
 0x541   :  { %1463 = vrcp.f32 %v485_v62  ;;  %v497_v15 = vand.u32 2147483648, %v485_v62  ;;  %vm491_vm3 = vweird.f32 %v485_v62  ;;  %v495_v17 = vand.u32 2147483647, %v485_v62 }
 0x542   :  { %v427_v16 = vor.u32 1.1754944e-38, %v426_v11  ;;  %vm425_vm4 = vcmp.eq.f32.partialorder %v424_v12, 8.507059e+37 }
 0x543   :  { %v498_v22 = vor.u32 1.1754944e-38, %v497_v15  ;;  %vm496_vm7 = vcmp.eq.f32.partialorder %v495_v17, 8.507059e+37 }
 0x546   :  { %v1462_v63 = vpop.eup %1461 }
 0x547   :  { %v1464_v0 = vpop.eup %1463  ;;  %v416_v2 = vmul.f32 %v1462_v63, %v414_v61  ;;  %vm421_vm14 = vweird.f32 %v1462_v63 }
 0x548   :  { %v487_v4 = vmul.f32 %v1464_v0, %v485_v62  ;;  %vm422_vm1 = vmor %vm420_vm15, %vm421_vm14  ;;  %vm492_vm2 = vweird.f32 %v1464_v0 }
 0x549   :  { %v417_v6 = vsub.f32 1.0, %v416_v2  ;;  %vm493_vm6 = vmor %vm491_vm3, %vm492_vm2 }
 0x54a   :  { %v488_v7 = vsub.f32 1.0, %v487_v4 }
 0x54b   :  { %v418_v8 = vmul.f32 %v1462_v63, %v417_v6 }
 0x54c   :  { %v489_v9 = vmul.f32 %v1464_v0, %v488_v7 }
 0x54d   :  { %v419_v10 = vadd.f32 %v1462_v63, %v418_v8 }
 0x54e   :  { %v490_v13 = vadd.f32 %v1464_v0, %v489_v9 }
 0x54f   :  { %v423_v14 = vsel %vm422_vm1, %v1462_v63, %v419_v10 }
 0x550   :  { %v428_v19 = vsel %vm425_vm4, %v427_v16, %v423_v14  ;;  %v494_v20 = vsel %vm493_vm6, %v1464_v0, %v490_v13 }
 0x551   :  { %v499_v25 = vsel %vm496_vm7, %v498_v22, %v494_v20  ;;  %v431_v27 = vmul.f32 %v428_v19, %v1786_v24 }
 0x552   :  { %v502_v29 = vmul.f32 %v499_v25, %v1789_v28 }
 0x5ad   :  { %v434_v18 = vpop.permute.xlu0 %433 }
 0x5ae   :  { %v436_v21 = vmul.f32 %v434_v18, %v428_v19 }
 0x5af   :  { %v505_v23 = vpop.permute.xlu1 %504 }
 0x5b0   :  { %438 = vrot.lane.b32.xlu2 %v436_v21, %s1642_s2  ;;  %v507_v26 = vmul.f32 %v505_v23, %v499_v25 }
 0x5b2   :  { %509 = vrot.lane.b32.xlu0 %v507_v26, %s1642_s2 }
 0x60a   :  { %v439_v30 = vpop.permute.xlu2 %438 }
 0x60b   :  { %v1816_v33 = vadd.f32 %v439_v30, %v431_v27 }
 0x60d   :  { %1465 = vtanh.f32 %v1816_v33 }
 0x613   :  { %v1466_v34 = vpop.eup %1465 }
 0x614   :  { %444 = vrot.lane.b32.xlu1 %v1466_v34, %s1638_s17 }
 0x624   :  { %v510_v35 = vpop.permute.xlu0 %509 }
 0x625   :  { %v1821_v38 = vadd.f32 %v510_v35, %v502_v29 }
 0x627   :  { %1467 = vtanh.f32 %v1821_v38 }
 0x62d   :  { %v1468_v39 = vpop.eup %1467 }
 0x62e   :  { %515 = vrot.lane.b32.xlu2 %v1468_v39, %s1638_s17 }
 0x686   :  { %v445_v40 = vpop.permute.xlu1 %444 }
 0x687   :  { %v447_v24 = vmul.f32 %v445_v40, %v428_v19 }
 0x688   :  { %v516_v42 = vpop.permute.xlu2 %515 }
 0x689   :  { %v521_v41 = vpack.c.bf16 %v447_v24, %v447_v24  ;;  %v518_v44 = vmul.f32 %v516_v42, %v499_v25 }
 0x68b   :  { %523 = vrot.lane.b32.xlu0 %v521_v41, %s1642_s2  ;;  %v592_v45 = vpack.c.bf16 %v518_v44, %v518_v44 }
 0x68d   :  { %594 = vrot.lane.b32.xlu1 %v592_v45, %s1642_s2 }
 0x6fd   :  { %v524_v46 = vpop.permute.xlu0 %523 }
 0x6fe   :  { %1369 = vmatmul.msk.bf16.vlgmr.msra.gmra.mxu2 %vm182_vm5, %v524_v46  ;;  %1371 = vmatmul.msk.bf16.vlgmr.msra.gmra.mxu3 %vm182_vm5, %v524_v46 }
 0x6ff   :  { %847 = vmatpush.bf16.msra.mxu2 %v1742_v31  ;;  %867 = vmatpush.bf16.msra.mxu3 %v1754_v36  ;;  %v595_v28 = vpop.permute.xlu1 %594 }
 0x700   :  { %1372 = vmatmul.msk.bf16.vlgmr.msrb.gmra.mxu1 %vm182_vm5, %v595_v28 }
 0x701   :  { %978 = vmatpush.bf16.msrb.mxu1 %v1742_v31 }
 0x703   :  { %848 = vmatpush.bf16.msra.mxu2 %v1748_v32  ;;  %868 = vmatpush.bf16.msra.mxu3 %v1757_v37 }
 0x705   :  { %979 = vmatpush.bf16.msrb.mxu1 %v1748_v32 }
 0x77d   :  { %v608_v48 = vpop.f32.mrf.mxu1 }
 0x781   :  { %v537_v50 = vpop.f32.mrf.mxu2  ;;  %v588_v51 = vpop.f32.mrf.mxu3 }
 0x782   :  { %v541_v52 = vadd.f32 %v537_v50, %v149_v49  ;;  %v589_v53 = vadd.f32 %v1778_v43, %v588_v51  ;;  %v1416_v49 = vld [vmem:[%s1985_s0 + $0x18] sm:$0xff] }
 0x784   :  { %1469 = vtanh.f32 %v541_v52  ;;  %v612_v54 = vadd.f32 %v608_v48, %v589_v53  ;;  %v1370_v60 = vmul.f32 -1.442695, %v541_v52 }
 0x785   :  { %v610_v55 = vpop.f32.mrf.mxu1 }
 0x786   :  { %1471 = vtanh.f32 %v612_v54  ;;  %v1373_v2 = vmul.f32 -1.442695, %v612_v54 }
 0x787   :  { %1473 = vpow2.f32 %v1370_v60 }
 0x789   :  { %v539_v56 = vpop.f32.mrf.mxu2  ;;  %v590_v57 = vpop.f32.mrf.mxu3 }
 0x78a   :  { %v1470_v58 = vpop.eup %1469 }
 0x78b   :  { %564 = vrot.lane.b32.xlu2 %v1470_v58, %s1638_s17 }
 0x78c   :  { %v1472_v59 = vpop.eup %1471 }
 0x78d   :  { %635 = vrot.lane.b32.xlu0 %v1472_v59, %s1638_s17  ;;  %v1474_v61 = vpop.eup %1473 }
 0x78e   :  { %v545_v62 = vadd.f32 1.0, %v1474_v61 }
 0x790   :  { %1475 = vrcp.f32 %v545_v62  ;;  %v557_v9 = vand.u32 2147483648, %v545_v62  ;;  %vm551_vm9 = vweird.f32 %v545_v62  ;;  %v555_v11 = vand.u32 2147483647, %v545_v62 }
 0x791   :  { %1477 = vpow2.f32 %v1373_v2 }
 0x792   :  { %v558_v13 = vor.u32 1.1754944e-38, %v557_v9  ;;  %vm556_vm11 = vcmp.eq.f32.partialorder %v555_v11, 8.507059e+37 }
 0x796   :  { %v1476_v63 = vpop.eup %1475 }
 0x797   :  { %v547_v0 = vmul.f32 %v1476_v63, %v545_v62  ;;  %v1478_v7 = vpop.eup %1477  ;;  %vm552_vm8 = vweird.f32 %v1476_v63 }
 0x798   :  { %v616_v10 = vadd.f32 1.0, %v1478_v7  ;;  %vm553_vm10 = vmor %vm551_vm9, %vm552_vm8 }
 0x799   :  { %v548_v4 = vsub.f32 1.0, %v547_v0 }
 0x79a   :  { %1479 = vrcp.f32 %v616_v10  ;;  %v628_v22 = vand.u32 2147483648, %v616_v10  ;;  %vm622_vm13 = vweird.f32 %v616_v10  ;;  %v626_v23 = vand.u32 2147483647, %v616_v10 }
 0x79b   :  { %v549_v6 = vmul.f32 %v1476_v63, %v548_v4 }
 0x79c   :  { %v629_v26 = vor.u32 1.1754944e-38, %v628_v22  ;;  %vm627_vm15 = vcmp.eq.f32.partialorder %v626_v23, 8.507059e+37 }
 0x79d   :  { %v550_v8 = vadd.f32 %v1476_v63, %v549_v6 }
 0x79f   :  { %v554_v12 = vsel %vm553_vm10, %v1476_v63, %v550_v8 }
 0x7a0   :  { %v559_v15 = vsel %vm556_vm11, %v558_v13, %v554_v12  ;;  %v1480_v17 = vpop.eup %1479 }
 0x7a1   :  { %v618_v18 = vmul.f32 %v1480_v17, %v616_v10  ;;  %vm623_vm12 = vweird.f32 %v1480_v17  ;;  %v562_v29 = vmul.f32 %v559_v15, %v1816_v33  ;;  %v1415_v33 = vld [vmem:[%s1985_s0 + $0x10] sm:$0xff] }
 0x7a2   :  { %vm624_vm14 = vmor %vm622_vm13, %vm623_vm12  ;;  %1333 = vmatmul.msk.bf16.gmra.mxu0 %vm119_vm0, %v1415_v33 }
 0x7a3   :  { %v619_v19 = vsub.f32 1.0, %v618_v18 }
 0x7a5   :  { %v620_v20 = vmul.f32 %v1480_v17, %v619_v19 }
 0x7a7   :  { %v621_v21 = vadd.f32 %v1480_v17, %v620_v20 }
 0x7a9   :  { %v625_v25 = vsel %vm624_vm14, %v1480_v17, %v621_v21 }
 0x7aa   :  { %v630_v30 = vsel %vm627_vm15, %v629_v26, %v625_v25 }
 0x7ab   :  { %v633_v40 = vmul.f32 %v630_v30, %v1821_v38 }
 0x7b2   :  { %1334 = vmatmul.msk.bf16.gmra.mxu0 %vm119_vm0, %v1416_v49 }
 0x7e5   :  { %v565_v14 = vpop.permute.xlu2 %564 }
 0x7e6   :  { %v567_v16 = vmul.f32 %v565_v14, %v559_v15 }
 0x7e8   :  { %569 = vrot.lane.b32.xlu1 %v567_v16, %s1642_s2 }
 0x7ff   :  { %v636_v27 = vpop.permute.xlu0 %635 }
 0x800   :  { %v638_v34 = vmul.f32 %v636_v27, %v630_v30 }
 0x802   :  { %640 = vrot.lane.b32.xlu2 %v638_v34, %s1642_s2 }
 0x81f   :  { %v151_v52 = vpop.f32.mrf.mxu0 }
 0x820   :  { %v152_v54 = vadd.f32 %v1730_v5, %v151_v52 }
 0x827   :  { %v1871_v53 = vpop.f32.mrf.mxu0 }
 0x85a   :  { %v570_v35 = vpop.permute.xlu1 %569 }
 0x85b   :  { %v1843_v39 = vadd.f32 %v570_v35, %v562_v29 }
 0x85c   :  { %v641_v24 = vpop.permute.xlu2 %640 }
 0x85d   :  { %1481 = vtanh.f32 %v1843_v39  ;;  %v1847_v41 = vadd.f32 %v641_v24, %v633_v40 }
 0x85f   :  { %1483 = vtanh.f32 %v1847_v41 }
 0x863   :  { %v1482_v42 = vpop.eup %1481 }
 0x864   :  { %575 = vrot.lane.b32.xlu0 %v1482_v42, %s1638_s17 }
 0x865   :  { %v1484_v44 = vpop.eup %1483 }
 0x866   :  { %646 = vrot.lane.b32.xlu1 %v1484_v44, %s1638_s17 }
 0x8d6   :  { %v576_v38 = vpop.permute.xlu0 %575 }
 0x8d7   :  { %v578_v45 = vmul.f32 %v576_v38, %v559_v15 }
 0x8d8   :  { %v647_v28 = vpop.permute.xlu1 %646 }
 0x8d9   :  { %v652_v46 = vpack.c.bf16 %v578_v45, %v578_v45  ;;  %v649_v47 = vmul.f32 %v647_v28, %v630_v30 }
 0x8db   :  { %654 = vrot.lane.b32.xlu2 %v652_v46, %s1642_s2  ;;  %v723_v48 = vpack.c.bf16 %v649_v47, %v649_v47 }
 0x8dd   :  { %725 = vrot.lane.b32.xlu0 %v723_v48, %s1642_s2 }
 0x935   :  { %v655_v50 = vpop.permute.xlu2 %654 }
 0x936   :  { %1374 = vmatmul.msk.bf16.vlgmr.msrb.gmra.mxu2 %vm182_vm5, %v655_v50  ;;  %1376 = vmatmul.msk.bf16.vlgmr.msrb.gmra.mxu3 %vm182_vm5, %v655_v50 }
 0x937   :  { %998 = vmatpush.bf16.msrb.mxu2 %v1754_v36  ;;  %1058 = vmatpush.bf16.msrb.mxu3 %v1710_v1  ;;  %v1874_v1 = vpop.f32.mrf.mxu0 }
 0x93b   :  { %999 = vmatpush.bf16.msrb.mxu2 %v1757_v37  ;;  %1059 = vmatpush.bf16.msrb.mxu3 %v1719_v3 }
 0x93f   :  { %v1877_v60 = vpop.f32.mrf.mxu0 }
 0x94f   :  { %v726_v51 = vpop.permute.xlu0 %725 }
 0x950   :  { %1377 = vmatmul.msk.bf16.vlgmr.msrb.gmra.mxu0 %vm182_vm5, %v726_v51 }
 0x951   :  { %1109 = vmatpush.bf16.msrb.mxu0 %v1742_v31 }
 0x955   :  { %1110 = vmatpush.bf16.msrb.mxu0 %v1748_v32 }
 0x9b9   :  { %v668_v55 = vpop.f32.mrf.mxu2  ;;  %v719_v56 = vpop.f32.mrf.mxu3 }
 0x9ba   :  { %v672_v57 = vadd.f32 %v668_v55, %v152_v54  ;;  %v720_v61 = vadd.f32 %v1778_v43, %v719_v56 }
 0x9bc   :  { %1485 = vtanh.f32 %v672_v57  ;;  %v1375_v6 = vmul.f32 -1.442695, %v672_v57  ;;  %v154_v57 = vadd.f32 %v1730_v5, %v1871_v53 }
 0x9c1   :  { %v670_v58 = vpop.f32.mrf.mxu2  ;;  %v721_v3 = vpop.f32.mrf.mxu3 }
 0x9c2   :  { %v1486_v59 = vpop.eup %1485 }
 0x9c3   :  { %695 = vrot.lane.b32.xlu1 %v1486_v59, %s1638_s17 }
 0x9cd   :  { %v739_v62 = vpop.f32.mrf.mxu0 }
 0x9ce   :  { %v743_v63 = vadd.f32 %v739_v62, %v720_v61 }
 0x9d0   :  { %1487 = vtanh.f32 %v743_v63  ;;  %v1378_v4 = vmul.f32 -1.442695, %v743_v63 }
 0x9d2   :  { %1489 = vpow2.f32 %v1378_v4 }
 0x9d3   :  { %1491 = vpow2.f32 %v1375_v6 }
 0x9d5   :  { %v741_v0 = vpop.f32.mrf.mxu0 }
 0x9d6   :  { %v1488_v2 = vpop.eup %1487 }
 0x9d7   :  { %766 = vrot.lane.b32.xlu2 %v1488_v2, %s1638_s17 }
 0x9d8   :  { %v1490_v7 = vpop.eup %1489 }
 0x9d9   :  { %v1492_v8 = vpop.eup %1491  ;;  %v747_v9 = vadd.f32 1.0, %v1490_v7 }
 0x9da   :  { %v676_v10 = vadd.f32 1.0, %v1492_v8 }
 0x9db   :  { %1493 = vrcp.f32 %v747_v9  ;;  %v759_v20 = vand.u32 2147483648, %v747_v9  ;;  %vm753_vm1 = vweird.f32 %v747_v9  ;;  %v757_v21 = vand.u32 2147483647, %v747_v9 }
 0x9dc   :  { %1495 = vrcp.f32 %v676_v10  ;;  %v688_v25 = vand.u32 2147483648, %v676_v10  ;;  %vm682_vm4 = vweird.f32 %v676_v10  ;;  %v686_v27 = vand.u32 2147483647, %v676_v10 }
 0x9dd   :  { %v760_v26 = vor.u32 1.1754944e-38, %v759_v20  ;;  %vm758_vm6 = vcmp.eq.f32.partialorder %v757_v21, 8.507059e+37 }
 0x9de   :  { %v689_v40 = vor.u32 1.1754944e-38, %v688_v25  ;;  %vm687_vm8 = vcmp.eq.f32.partialorder %v686_v27, 8.507059e+37 }
 0x9e1   :  { %v1494_v11 = vpop.eup %1493 }
 0x9e2   :  { %v1496_v12 = vpop.eup %1495  ;;  %v749_v13 = vmul.f32 %v1494_v11, %v747_v9  ;;  %vm754_vm0 = vweird.f32 %v1494_v11 }
 0x9e3   :  { %v678_v14 = vmul.f32 %v1496_v12, %v676_v10  ;;  %vm755_vm2 = vmor %vm753_vm1, %vm754_vm0  ;;  %vm683_vm3 = vweird.f32 %v1496_v12 }
 0x9e4   :  { %v750_v15 = vsub.f32 1.0, %v749_v13  ;;  %vm684_vm7 = vmor %vm682_vm4, %vm683_vm3 }
 0x9e5   :  { %v679_v16 = vsub.f32 1.0, %v678_v14 }
 0x9e6   :  { %v751_v17 = vmul.f32 %v1494_v11, %v750_v15 }
 0x9e7   :  { %v680_v18 = vmul.f32 %v1496_v12, %v679_v16 }
 0x9e8   :  { %v752_v19 = vadd.f32 %v1494_v11, %v751_v17 }
 0x9e9   :  { %v681_v22 = vadd.f32 %v1496_v12, %v680_v18 }
 0x9ea   :  { %v756_v23 = vsel %vm755_vm2, %v1494_v11, %v752_v19 }
 0x9eb   :  { %v761_v34 = vsel %vm758_vm6, %v760_v26, %v756_v23  ;;  %v685_v29 = vsel %vm684_vm7, %v1496_v12, %v681_v22 }
 0x9ec   :  { %v690_v42 = vsel %vm687_vm8, %v689_v40, %v685_v29  ;;  %v764_v33 = vmul.f32 %v761_v34, %v1847_v41 }
 0x9ed   :  { %v693_v46 = vmul.f32 %v690_v42, %v1843_v39 }
 0xa31   :  { %v767_v30 = vpop.permute.xlu2 %766 }
 0xa32   :  { %v769_v35 = vmul.f32 %v767_v30, %v761_v34 }
 0xa34   :  { %771 = vrot.lane.b32.xlu1 %v769_v35, %s1642_s2 }
 0xa35   :  { %v696_v24 = vpop.permute.xlu1 %695 }
 0xa36   :  { %v698_v44 = vmul.f32 %v696_v24, %v690_v42 }
 0xa38   :  { %700 = vrot.lane.b32.xlu0 %v698_v44, %s1642_s2 }
 0xaa6   :  { %v772_v38 = vpop.permute.xlu1 %771 }
 0xaa7   :  { %v1884_v45 = vadd.f32 %v772_v38, %v764_v33 }
 0xaa9   :  { %1497 = vtanh.f32 %v1884_v45 }
 0xaaa   :  { %v701_v28 = vpop.permute.xlu0 %700 }
 0xaab   :  { %v1888_v47 = vadd.f32 %v701_v28, %v693_v46 }
 0xaad   :  { %1499 = vtanh.f32 %v1888_v47 }
 0xaaf   :  { %v1498_v48 = vpop.eup %1497 }
 0xab0   :  { %777 = vrot.lane.b32.xlu0 %v1498_v48, %s1638_s17 }
 0xab3   :  { %v1500_v49 = vpop.eup %1499 }
 0xab4   :  { %706 = vrot.lane.b32.xlu2 %v1500_v49, %s1638_s17 }
 0xb0e   :  { %v707_v50 = vpop.permute.xlu2 %706 }
 0xb0f   :  { %v709_v41 = vmul.f32 %v707_v50, %v690_v42 }
 0xb11   :  { %v783_v51 = vpack.c.bf16 %v709_v41, %v709_v41 }
 0xb13   :  { %785 = vrot.lane.b32.xlu1 %v783_v51, %s1642_s2 }
 0xb22   :  { %v778_v52 = vpop.permute.xlu0 %777 }
 0xb23   :  { %v780_v39 = vmul.f32 %v778_v52, %v761_v34 }
 0xb25   :  { %v854_v54 = vpack.c.bf16 %v780_v39, %v780_v39 }
 0xb27   :  { %856 = vrot.lane.b32.xlu2 %v854_v54, %s1642_s2  ;;  %v1929_v54 = vld [vmem:[%s1988_s3] ss:$0 sm:$0xff] }
 0xb81   :  { %v857_v55 = vpop.permute.xlu2 %856 }
 0xb82   :  { %1382 = vmatmul.msk.bf16.vlgmr.msra.gmra.mxu3 %vm182_vm5, %v857_v55  ;;  %v157_v55 = vadd.f32 %v1929_v54, %v1874_v1 }
 0xb83   :  { %1207 = vmatpush.bf16.msra.mxu3 %v1754_v36 }
 0xb85   :  { %v786_v56 = vpop.permute.xlu1 %785 }
 0xb86   :  { %1379 = vmatmul.msk.bf16.vlgmr.msra.gmra.mxu1 %vm182_vm5, %v786_v56  ;;  %1381 = vmatmul.msk.bf16.vlgmr.msra.gmra.mxu2 %vm182_vm5, %v786_v56 }
 0xb87   :  { %1129 = vmatpush.bf16.msra.mxu1 %v1754_v36  ;;  %1187 = vmatpush.bf16.msra.mxu2 %v1742_v31 }
 0xb88   :  { %1208 = vmatpush.bf16.msra.mxu3 %v1757_v37 }
 0xb8b   :  { %1130 = vmatpush.bf16.msra.mxu1 %v1757_v37  ;;  %1188 = vmatpush.bf16.msra.mxu2 %v1748_v32 }
 0xc03   :  { %v799_v58 = vpop.f32.mrf.mxu1 }
 0xc04   :  { %v803_v3 = vadd.f32 %v799_v58, %v154_v57 }
 0xc05   :  { %v870_v59 = vpop.f32.mrf.mxu3 }
 0xc06   :  { %1501 = vtanh.f32 %v803_v3  ;;  %v1380_v32 = vmul.f32 -1.442695, %v803_v3 }
 0xc09   :  { %v850_v61 = vpop.f32.mrf.mxu2 }
 0xc0a   :  { %v851_v62 = vadd.f32 %v1778_v43, %v850_v61 }
 0xc0b   :  { %v801_v63 = vpop.f32.mrf.mxu1 }
 0xc0c   :  { %v1502_v36 = vpop.eup %1501  ;;  %v874_v0 = vadd.f32 %v870_v59, %v851_v62 }
 0xc0d   :  { %826 = vrot.lane.b32.xlu0 %v1502_v36, %s1638_s17  ;;  %v872_v31 = vpop.f32.mrf.mxu3 }
 0xc0e   :  { %1503 = vtanh.f32 %v874_v0  ;;  %v1383_v5 = vmul.f32 -1.442695, %v874_v0 }
 0xc0f   :  { %1505 = vpow2.f32 %v1380_v32 }
 0xc10   :  { %1507 = vpow2.f32 %v1383_v5 }
 0xc11   :  { %v852_v37 = vpop.f32.mrf.mxu2 }
 0xc14   :  { %v1504_v2 = vpop.eup %1503 }
 0xc15   :  { %897 = vrot.lane.b32.xlu1 %v1504_v2, %s1638_s17  ;;  %v1506_v53 = vpop.eup %1505 }
 0xc16   :  { %v807_v4 = vadd.f32 1.0, %v1506_v53  ;;  %v1508_v6 = vpop.eup %1507 }
 0xc17   :  { %v878_v7 = vadd.f32 1.0, %v1508_v6 }
 0xc18   :  { %1509 = vrcp.f32 %v807_v4  ;;  %v819_v16 = vand.u32 2147483648, %v807_v4  ;;  %vm813_vm10 = vweird.f32 %v807_v4  ;;  %v817_v17 = vand.u32 2147483647, %v807_v4 }
 0xc19   :  { %1511 = vrcp.f32 %v878_v7  ;;  %v890_v26 = vand.u32 2147483648, %v878_v7  ;;  %vm884_vm14 = vweird.f32 %v878_v7  ;;  %v888_v27 = vand.u32 2147483647, %v878_v7 }
 0xc1a   :  { %v820_v20 = vor.u32 1.1754944e-38, %v819_v16  ;;  %vm818_vm12 = vcmp.eq.f32.partialorder %v817_v17, 8.507059e+37 }
 0xc1b   :  { %v891_v34 = vor.u32 1.1754944e-38, %v890_v26  ;;  %vm889_vm0 = vcmp.eq.f32.partialorder %v888_v27, 8.507059e+37 }
 0xc1e   :  { %v1510_v8 = vpop.eup %1509 }
 0xc1f   :  { %v809_v9 = vmul.f32 %v1510_v8, %v807_v4  ;;  %v1512_v11 = vpop.eup %1511  ;;  %vm814_vm9 = vweird.f32 %v1510_v8 }
 0xc20   :  { %v880_v13 = vmul.f32 %v1512_v11, %v878_v7  ;;  %vm815_vm11 = vmor %vm813_vm10, %vm814_vm9  ;;  %vm885_vm13 = vweird.f32 %v1512_v11 }
 0xc21   :  { %v810_v10 = vsub.f32 1.0, %v809_v9  ;;  %vm886_vm15 = vmor %vm884_vm14, %vm885_vm13 }
 0xc22   :  { %v881_v15 = vsub.f32 1.0, %v880_v13 }
 0xc23   :  { %v811_v12 = vmul.f32 %v1510_v8, %v810_v10 }
 0xc24   :  { %v882_v19 = vmul.f32 %v1512_v11, %v881_v15 }
 0xc25   :  { %v812_v14 = vadd.f32 %v1510_v8, %v811_v12 }
 0xc26   :  { %v883_v25 = vadd.f32 %v1512_v11, %v882_v19 }
 0xc27   :  { %v816_v18 = vsel %vm815_vm11, %v1510_v8, %v812_v14 }
 0xc28   :  { %v821_v22 = vsel %vm818_vm12, %v820_v20, %v816_v18  ;;  %v887_v30 = vsel %vm886_vm15, %v1512_v11, %v883_v25 }
 0xc29   :  { %v892_v35 = vsel %vm889_vm0, %v891_v34, %v887_v30  ;;  %v824_v24 = vmul.f32 %v821_v22, %v1888_v47 }
 0xc2a   :  { %v895_v38 = vmul.f32 %v892_v35, %v1884_v45 }
 0xc7f   :  { %v827_v21 = vpop.permute.xlu0 %826 }
 0xc80   :  { %v829_v23 = vmul.f32 %v827_v21, %v821_v22 }
 0xc82   :  { %831 = vrot.lane.b32.xlu2 %v829_v23, %s1642_s2 }
 0xc87   :  { %v898_v29 = vpop.permute.xlu1 %897 }
 0xc88   :  { %v900_v40 = vmul.f32 %v898_v29, %v892_v35 }
 0xc8a   :  { %902 = vrot.lane.b32.xlu0 %v900_v40, %s1642_s2 }
 0xcdc   :  { %v832_v42 = vpop.permute.xlu2 %831 }
 0xcdd   :  { %v1912_v44 = vadd.f32 %v832_v42, %v824_v24 }
 0xcdf   :  { %1513 = vtanh.f32 %v1912_v44 }
 0xce5   :  { %v1514_v33 = vpop.eup %1513 }
 0xce6   :  { %837 = vrot.lane.b32.xlu1 %v1514_v33, %s1638_s17 }
 0xcfc   :  { %v903_v46 = vpop.permute.xlu0 %902 }
 0xcfd   :  { %v1917_v28 = vadd.f32 %v903_v46, %v895_v38 }
 0xcff   :  { %1515 = vtanh.f32 %v1917_v28 }
 0xd05   :  { %v1516_v48 = vpop.eup %1515 }
 0xd06   :  { %908 = vrot.lane.b32.xlu2 %v1516_v48, %s1638_s17 }
 0xd58   :  { %v838_v49 = vpop.permute.xlu1 %837 }
 0xd59   :  { %v840_v47 = vmul.f32 %v838_v49, %v821_v22 }
 0xd5b   :  { %v914_v50 = vpack.c.bf16 %v840_v47, %v840_v47 }
 0xd5d   :  { %916 = vrot.lane.b32.xlu0 %v914_v50, %s1642_s2 }
 0xd60   :  { %v909_v41 = vpop.permute.xlu2 %908 }
 0xd61   :  { %v911_v51 = vmul.f32 %v909_v41, %v892_v35 }
 0xd63   :  { %v985_v52 = vpack.c.bf16 %v911_v51, %v911_v51 }
 0xd65   :  { %987 = vrot.lane.b32.xlu1 %v985_v52, %s1642_s2  ;;  %v159_v52 = vadd.f32 %v1929_v54, %v1877_v60 }
 0xdcf   :  { %v917_v39 = vpop.permute.xlu0 %916 }
 0xdd0   :  { %1384 = vmatmul.msk.bf16.vlgmr.msra.gmra.mxu0 %vm182_vm5, %v917_v39  ;;  %1386 = vmatmul.msk.bf16.vlgmr.msrb.gmra.mxu1 %vm182_vm5, %v917_v39 }
 0xdd7   :  { %v988_v45 = vpop.permute.xlu1 %987 }
 0xdd8   :  { %1387 = vmatmul.msk.bf16.vlgmr.msrb.gmra.mxu2 %vm182_vm5, %v988_v45 }
 0xe4d   :  { %v930_v56 = vpop.f32.mrf.mxu0  ;;  %v981_v57 = vpop.f32.mrf.mxu1 }
 0xe4e   :  { %v934_v58 = vadd.f32 %v930_v56, %v157_v55  ;;  %v982_v62 = vadd.f32 %v1778_v43, %v981_v57 }
 0xe50   :  { %1517 = vtanh.f32 %v934_v58  ;;  %v1385_v37 = vmul.f32 -1.442695, %v934_v58  ;;  %v1959_v58 = vld [vmem:[%s1991_s6] ss:$0 sm:$0xff] }
 0xe55   :  { %v932_v3 = vpop.f32.mrf.mxu0  ;;  %v983_v59 = vpop.f32.mrf.mxu1 }
 0xe56   :  { %v1518_v61 = vpop.eup %1517 }
 0xe57   :  { %957 = vrot.lane.b32.xlu2 %v1518_v61, %s1638_s17 }
 0xe5b   :  { %v1001_v63 = vpop.f32.mrf.mxu2 }
 0xe5c   :  { %v1005_v36 = vadd.f32 %v1001_v63, %v982_v62 }
 0xe5e   :  { %1519 = vtanh.f32 %v1005_v36  ;;  %v1388_v6 = vmul.f32 -1.442695, %v1005_v36 }
 0xe5f   :  { %1521 = vpow2.f32 %v1385_v37 }
 0xe63   :  { %v1003_v0 = vpop.f32.mrf.mxu2 }
 0xe64   :  { %v1520_v31 = vpop.eup %1519 }
 0xe65   :  { %1028 = vrot.lane.b32.xlu0 %v1520_v31, %s1638_s17  ;;  %v1522_v1 = vpop.eup %1521 }
 0xe66   :  { %v938_v2 = vadd.f32 1.0, %v1522_v1 }
 0xe68   :  { %1523 = vrcp.f32 %v938_v2  ;;  %v950_v43 = vand.u32 2147483648, %v938_v2  ;;  %vm944_vm2 = vweird.f32 %v938_v2  ;;  %v948_v8 = vand.u32 2147483647, %v938_v2 }
 0xe69   :  { %1525 = vpow2.f32 %v1388_v6 }
 0xe6a   :  { %v951_v10 = vor.u32 1.1754944e-38, %v950_v43  ;;  %vm949_vm4 = vcmp.eq.f32.partialorder %v948_v8, 8.507059e+37 }
 0xe6e   :  { %v1524_v32 = vpop.eup %1523 }
 0xe6f   :  { %v940_v5 = vmul.f32 %v1524_v32, %v938_v2  ;;  %vm945_vm1 = vweird.f32 %v1524_v32  ;;  %v1526_v14 = vpop.eup %1525 }
 0xe70   :  { %vm946_vm3 = vmor %vm944_vm2, %vm945_vm1  ;;  %v1009_v15 = vadd.f32 1.0, %v1526_v14 }
 0xe71   :  { %v941_v53 = vsub.f32 1.0, %v940_v5 }
 0xe72   :  { %1527 = vrcp.f32 %v1009_v15  ;;  %v1021_v21 = vand.u32 2147483648, %v1009_v15  ;;  %vm1015_vm7 = vweird.f32 %v1009_v15  ;;  %v1019_v22 = vand.u32 2147483647, %v1009_v15 }
 0xe73   :  { %v942_v4 = vmul.f32 %v1524_v32, %v941_v53 }
 0xe74   :  { %v1022_v25 = vor.u32 1.1754944e-38, %v1021_v21  ;;  %vm1020_vm9 = vcmp.eq.f32.partialorder %v1019_v22, 8.507059e+37 }
 0xe75   :  { %v943_v7 = vadd.f32 %v1524_v32, %v942_v4 }
 0xe77   :  { %v947_v9 = vsel %vm946_vm3, %v1524_v32, %v943_v7 }
 0xe78   :  { %v952_v11 = vsel %vm949_vm4, %v951_v10, %v947_v9  ;;  %v1528_v16 = vpop.eup %1527 }
 0xe79   :  { %v1011_v17 = vmul.f32 %v1528_v16, %v1009_v15  ;;  %vm1016_vm6 = vweird.f32 %v1528_v16  ;;  %v955_v34 = vmul.f32 %v952_v11, %v1912_v44 }
 0xe7a   :  { %vm1017_vm8 = vmor %vm1015_vm7, %vm1016_vm6 }
 0xe7b   :  { %v1012_v18 = vsub.f32 1.0, %v1011_v17 }
 0xe7d   :  { %v1013_v19 = vmul.f32 %v1528_v16, %v1012_v18 }
 0xe7f   :  { %v1014_v20 = vadd.f32 %v1528_v16, %v1013_v19 }
 0xe81   :  { %v1018_v23 = vsel %vm1017_vm8, %v1528_v16, %v1014_v20 }
 0xe82   :  { %v1023_v27 = vsel %vm1020_vm9, %v1022_v25, %v1018_v23 }
 0xe83   :  { %v1026_v24 = vmul.f32 %v1023_v27, %v1917_v28 }
 0xeb1   :  { %v958_v12 = vpop.permute.xlu2 %957 }
 0xeb2   :  { %v960_v13 = vmul.f32 %v958_v12, %v952_v11 }
 0xeb4   :  { %962 = vrot.lane.b32.xlu1 %v960_v13, %s1642_s2 }
 0xed7   :  { %v1029_v26 = vpop.permute.xlu0 %1028 }
 0xed8   :  { %v1031_v30 = vmul.f32 %v1029_v26, %v1023_v27 }
 0xeda   :  { %1033 = vrot.lane.b32.xlu2 %v1031_v30, %s1642_s2 }
 0xf26   :  { %v963_v29 = vpop.permute.xlu1 %962 }
 0xf27   :  { %v1939_v35 = vadd.f32 %v963_v29, %v955_v34 }
 0xf29   :  { %1529 = vtanh.f32 %v1939_v35 }
 0xf2f   :  { %v1530_v40 = vpop.eup %1529 }
 0xf30   :  { %968 = vrot.lane.b32.xlu0 %v1530_v40, %s1638_s17 }
 0xf34   :  { %v1034_v42 = vpop.permute.xlu2 %1033 }
 0xf35   :  { %v1944_v33 = vadd.f32 %v1034_v42, %v1026_v24 }
 0xf37   :  { %1531 = vtanh.f32 %v1944_v33 }
 0xf3d   :  { %v1532_v38 = vpop.eup %1531 }
 0xf3e   :  { %1039 = vrot.lane.b32.xlu1 %v1532_v38, %s1638_s17 }
 0xfa2   :  { %v969_v46 = vpop.permute.xlu0 %968 }
 0xfa3   :  { %v971_v44 = vmul.f32 %v969_v46, %v952_v11 }
 0xfa5   :  { %v1045_v48 = vpack.c.bf16 %v971_v44, %v971_v44 }
 0xfa7   :  { %1047 = vrot.lane.b32.xlu2 %v1045_v48, %s1642_s2 }
 0xfb0   :  { %v1040_v49 = vpop.permute.xlu1 %1039 }
 0xfb1   :  { %v1042_v47 = vmul.f32 %v1040_v49, %v1023_v27 }
 0xfb3   :  { %v1116_v50 = vpack.c.bf16 %v1042_v47, %v1042_v47 }
 0xfb5   :  { %1118 = vrot.lane.b32.xlu0 %v1116_v50, %s1642_s2 }
0x1001   :  { %v1048_v41 = vpop.permute.xlu2 %1047 }
0x1002   :  { %1389 = vmatmul.msk.bf16.vlgmr.msrb.gmra.mxu3 %vm182_vm5, %v1048_v41  ;;  %1391 = vmatmul.msk.bf16.vlgmr.msrb.gmra.mxu0 %vm182_vm5, %v1048_v41 }
0x1027   :  { %v1119_v28 = vpop.permute.xlu0 %1118 }
0x1028   :  { %1392 = vmatmul.msk.bf16.vlgmr.msra.gmra.mxu1 %vm182_vm5, %v1119_v28 }
0x107f   :  { %v1112_v51 = vpop.f32.mrf.mxu0 }
0x1080   :  { %v1113_v3 = vadd.f32 %v1959_v58, %v1112_v51 }
0x1085   :  { %v1061_v39 = vpop.f32.mrf.mxu3 }
0x1086   :  { %v1065_v45 = vadd.f32 %v1061_v39, %v159_v52 }
0x1087   :  { %v1114_v55 = vpop.f32.mrf.mxu0 }
0x1088   :  { %1533 = vtanh.f32 %v1065_v45  ;;  %v1390_v54 = vmul.f32 -1.442695, %v1065_v45 }
0x108d   :  { %v1063_v56 = vpop.f32.mrf.mxu3 }
0x108e   :  { %v1534_v57 = vpop.eup %1533 }
0x108f   :  { %1088 = vrot.lane.b32.xlu1 %v1534_v57, %s1638_s17 }
0x10a5   :  { %v1132_v59 = vpop.f32.mrf.mxu1 }
0x10a6   :  { %v1136_v61 = vadd.f32 %v1132_v59, %v1113_v3 }
0x10a8   :  { %1535 = vtanh.f32 %v1136_v61  ;;  %v1393_v63 = vmul.f32 -1.442695, %v1136_v61 }
0x10a9   :  { %1537 = vpow2.f32 %v1390_v54 }
0x10aa   :  { %1539 = vpow2.f32 %v1393_v63 }
0x10ad   :  { %v1134_v62 = vpop.f32.mrf.mxu1 }
0x10ae   :  { %v1536_v60 = vpop.eup %1535 }
0x10af   :  { %1159 = vrot.lane.b32.xlu2 %v1536_v60, %s1638_s17  ;;  %v1538_v36 = vpop.eup %1537 }
0x10b0   :  { %v1069_v0 = vadd.f32 1.0, %v1538_v36  ;;  %v1540_v31 = vpop.eup %1539 }
0x10b1   :  { %v1140_v37 = vadd.f32 1.0, %v1540_v31 }
0x10b2   :  { %1541 = vrcp.f32 %v1069_v0  ;;  %v1081_v43 = vand.u32 2147483648, %v1069_v0  ;;  %vm1075_vm11 = vweird.f32 %v1069_v0  ;;  %v1079_v8 = vand.u32 2147483647, %v1069_v0 }
0x10b3   :  { %1543 = vrcp.f32 %v1140_v37  ;;  %v1152_v16 = vand.u32 2147483648, %v1140_v37  ;;  %vm1146_vm15 = vweird.f32 %v1140_v37  ;;  %v1150_v17 = vand.u32 2147483647, %v1140_v37 }
0x10b4   :  { %v1082_v11 = vor.u32 1.1754944e-38, %v1081_v43  ;;  %vm1080_vm13 = vcmp.eq.f32.partialorder %v1079_v8, 8.507059e+37  ;;  %v1428_v43 = vld [vmem:[%s1993_s8] ss:$0 sm:$0xff] }
0x10b5   :  { %v1153_v19 = vor.u32 1.1754944e-38, %v1152_v16  ;;  %vm1151_vm1 = vcmp.eq.f32.partialorder %v1150_v17, 8.507059e+37 }
0x10b8   :  { %v1542_v1 = vpop.eup %1541 }
0x10b9   :  { %v1071_v2 = vmul.f32 %v1542_v1, %v1069_v0  ;;  %v1544_v5 = vpop.eup %1543  ;;  %vm1076_vm10 = vweird.f32 %v1542_v1 }
0x10ba   :  { %v1142_v4 = vmul.f32 %v1544_v5, %v1140_v37  ;;  %vm1077_vm12 = vmor %vm1075_vm11, %vm1076_vm10  ;;  %vm1147_vm14 = vweird.f32 %v1544_v5 }
0x10bb   :  { %v1072_v32 = vsub.f32 1.0, %v1071_v2  ;;  %vm1148_vm0 = vmor %vm1146_vm15, %vm1147_vm14 }
0x10bc   :  { %v1143_v7 = vsub.f32 1.0, %v1142_v4 }
0x10bd   :  { %v1073_v53 = vmul.f32 %v1542_v1, %v1072_v32  ;;  %v1418_v32 = vld [vmem:[#allocation6 + $0x8] sm:$0xff] }
0x10be   :  { %v1144_v10 = vmul.f32 %v1544_v5, %v1143_v7  ;;  %1285 = vmatpush.bf16.msra.mxu0 %v1418_v32 }
0x10bf   :  { %v1074_v6 = vadd.f32 %v1542_v1, %v1073_v53 }
0x10c0   :  { %v1145_v15 = vadd.f32 %v1544_v5, %v1144_v10 }
0x10c1   :  { %v1078_v9 = vsel %vm1077_vm12, %v1542_v1, %v1074_v6 }
0x10c2   :  { %v1083_v13 = vsel %vm1080_vm13, %v1082_v11, %v1078_v9  ;;  %v1149_v18 = vsel %vm1148_vm0, %v1544_v5, %v1145_v15  ;;  %v1417_v5 = vld [vmem:[#allocation6] sm:$0xff] }
0x10c3   :  { %v1154_v21 = vsel %vm1151_vm1, %v1153_v19, %v1149_v18  ;;  %v1086_v23 = vmul.f32 %v1083_v13, %v1939_v35  ;;  %1286 = vmatpush.bf16.msra.mxu0 %v1417_v5 }
0x10c4   :  { %v1157_v27 = vmul.f32 %v1154_v21, %v1944_v33 }
0x1101   :  { %v1089_v12 = vpop.permute.xlu1 %1088 }
0x1102   :  { %v1091_v14 = vmul.f32 %v1089_v12, %v1083_v13 }
0x1104   :  { %1093 = vrot.lane.b32.xlu0 %v1091_v14, %s1642_s2 }
0x1109   :  { %v1160_v20 = vpop.permute.xlu2 %1159 }
0x110a   :  { %v1162_v22 = vmul.f32 %v1160_v20, %v1154_v21 }
0x110c   :  { %1164 = vrot.lane.b32.xlu1 %v1162_v22, %s1642_s2 }
0x1176   :  { %v1094_v25 = vpop.permute.xlu0 %1093 }
0x1177   :  { %v1096_v26 = vadd.f32 %v1094_v25, %v1086_v23 }
0x1179   :  { %1545 = vtanh.f32 %v1096_v26 }
0x117e   :  { %v1165_v30 = vpop.permute.xlu1 %1164 }
0x117f   :  { %v1546_v34 = vpop.eup %1545  ;;  %v1167_v29 = vadd.f32 %v1165_v30, %v1157_v27 }
0x1180   :  { %1099 = vrot.lane.b32.xlu2 %v1546_v34, %s1638_s17 }
0x1181   :  { %1547 = vtanh.f32 %v1167_v29 }
0x1187   :  { %v1548_v40 = vpop.eup %1547 }
0x1188   :  { %1170 = vrot.lane.b32.xlu0 %v1548_v40, %s1638_s17 }
0x11da   :  { %v1100_v24 = vpop.permute.xlu2 %1099 }
0x11db   :  { %v1102_v42 = vmul.f32 %v1100_v24, %v1083_v13 }
0x11dd   :  { %v1174_v38 = vpack.c.bf16 %v1102_v42, %v1102_v42 }
0x11df   :  { %1176 = vrot.lane.b32.xlu1 %v1174_v38, %s1642_s2 }
0x11fa   :  { %v1171_v35 = vpop.permute.xlu0 %1170 }
0x11fb   :  { %v1173_v46 = vmul.f32 %v1171_v35, %v1154_v21 }
0x11fd   :  { %v1194_v44 = vpack.c.bf16 %v1173_v46, %v1173_v46 }
0x11ff   :  { %1196 = vrot.lane.b32.xlu2 %v1194_v44, %s1642_s2 }
0x1251   :  { %v1177_v33 = vpop.permute.xlu1 %1176 }
0x1252   :  { %1394 = vmatmul.msk.bf16.vlgmr.msra.gmra.mxu2 %vm182_vm5, %v1177_v33 }
0x1259   :  { %v1197_v48 = vpop.permute.xlu2 %1196 }
0x125a   :  { %1395 = vmatmul.msk.bf16.vlgmr.msra.gmra.mxu3 %vm182_vm5, %v1197_v48 }
0x12d5   :  { %v1190_v49 = vpop.f32.mrf.mxu2 }
0x12d6   :  { %v1191_v47 = vadd.f32 %v1959_v58, %v1190_v49 }
0x12dd   :  { %v1192_v50 = vpop.f32.mrf.mxu2  ;;  %v1210_v41 = vpop.f32.mrf.mxu3 }
0x12de   :  { %v1214_v28 = vadd.f32 %v1210_v41, %v1191_v47 }
0x12e0   :  { %1549 = vtanh.f32 %v1214_v28  ;;  %v1396_v39 = vmul.f32 -1.442695, %v1214_v28 }
0x12e2   :  { %1551 = vpow2.f32 %v1396_v39 }
0x12e5   :  { %v1212_v51 = vpop.f32.mrf.mxu3 }
0x12e6   :  { %v1550_v52 = vpop.eup %1549 }
0x12e7   :  { %1237 = vrot.lane.b32.xlu0 %v1550_v52, %s1638_s17 }
0x12e8   :  { %v1552_v45 = vpop.eup %1551 }
0x12e9   :  { %v1218_v55 = vadd.f32 1.0, %v1552_v45 }
0x12eb   :  { %1553 = vrcp.f32 %v1218_v55  ;;  %v1230_v58 = vand.u32 2147483648, %v1218_v55  ;;  %vm1224_vm3 = vweird.f32 %v1218_v55  ;;  %v1228_v62 = vand.u32 2147483647, %v1218_v55 }
0x12ed   :  { %v1231_v54 = vor.u32 1.1754944e-38, %v1230_v58  ;;  %vm1229_vm6 = vcmp.eq.f32.partialorder %v1228_v62, 8.507059e+37 }
0x12f1   :  { %v1554_v56 = vpop.eup %1553 }
0x12f2   :  { %v1220_v57 = vmul.f32 %v1554_v56, %v1218_v55  ;;  %vm1225_vm2 = vweird.f32 %v1554_v56 }
0x12f3   :  { %vm1226_vm4 = vmor %vm1224_vm3, %vm1225_vm2 }
0x12f4   :  { %v1221_v3 = vsub.f32 1.0, %v1220_v57 }
0x12f6   :  { %v1222_v59 = vmul.f32 %v1554_v56, %v1221_v3 }
0x12f8   :  { %v1223_v61 = vadd.f32 %v1554_v56, %v1222_v59 }
0x12fa   :  { %v1227_v60 = vsel %vm1226_vm4, %v1554_v56, %v1223_v61 }
0x12fb   :  { %v1232_v36 = vsel %vm1229_vm6, %v1231_v54, %v1227_v60 }
0x12fc   :  { %v1235_v31 = vmul.f32 %v1232_v36, %v1167_v29 }
0x1359   :  { %v1238_v63 = vpop.permute.xlu0 %1237 }
0x135a   :  { %v1240_v0 = vmul.f32 %v1238_v63, %v1232_v36 }
0x135c   :  { %1242 = vrot.lane.b32.xlu1 %v1240_v0, %s1642_s2 }
0x13ce   :  { %v1243_v37 = vpop.permute.xlu1 %1242 }
0x13cf   :  { %v1245_v1 = vadd.f32 %v1243_v37, %v1235_v31 }
0x13d1   :  { %1555 = vtanh.f32 %v1245_v1 }
0x13d7   :  { %v1556_v2 = vpop.eup %1555 }
0x13d8   :  { %1248 = vrot.lane.b32.xlu2 %v1556_v2, %s1638_s17 }
0x1432   :  { %v1249_v53 = vpop.permute.xlu2 %1248 }
0x1433   :  { %v1251_v4 = vmul.f32 %v1249_v53, %v1232_v36 }
0x1435   :  { %v1252_v6 = vpack.c.bf16 %v1251_v4, %v1251_v4 }
0x1437   :  { %1262 = vrot.lane.b32.xlu0 %v1252_v6, %s1642_s2 }
0x14a9   :  { %v1263_v7 = vpop.permute.xlu0 %1262 }
0x14aa   :  { %1405 = vmatmul.msk.bf16.vlgmr.msra.gmra.mxu0 %vm182_vm5, %v1263_v7 }
0x1527   :  { %v1288_v8 = vpop.f32.mrf.mxu0 }
0x1528   :  { %v1289_v9 = vadd.f32 %v1428_v43, %v1288_v8 }
0x152a   :  { %1292 = vst [vmem:[#allocation8] sm:$0xff] %v1289_v9 }
0x152b   :  { %1303 = dma.vmem_to_hbm [thread:$0]  %s1299_s7, 128, %s1301_s23, [#allocation5]  }
0x152f   :  { %v1290_v10 = vpop.f32.mrf.mxu0 }
0x1530   :  { %1635 = dma.done.wait [#allocation5], 128  }
0x1531   :  { %1636 = vsyncadd [#allocation5], 4294967168 }
0x1532   :  { %1308 = vsyncpa [#allocation4], 1 }
0x1533   :  { %1309 = vsyncpa [#allocation7], 1 }
0x1534   :  { %1310 = vsyncpa [#allocation5], 1 }

</bundles_post_ra>
